<compile_context>
chip_gen: v7x
topology: tpu7x:2x2x1
jax: 0.10.0
libtpu: 0.0.40
codegen_flags: <defaults>
</compile_context>

<pallas_src>
import functools
import math

import jax
import jax.numpy as jnp
from jax import lax
from jax.experimental import pallas as pl
from jax.experimental.pallas import tpu as pltpu

LEAKY_SLOPE = 0.2
BN_EPS = 1e-5      # nn.BatchNorm1d eps (eval, fresh running stats)
AGG_EPS = 1e-9     # GIPAConv.agg_func variance epsilon


# ------------------------------ small helpers ------------------------------

def _round_up(x, m):
    return ((x + m - 1) // m) * m


def _node_tiles(n):
    """Returns (dense node row tile, dst tile for aggregation, padded node count)."""
    n = max(int(n), 1)
    if n < 128:
        t = _round_up(n, 8)
        return t, t, t
    td = 128
    tn = 1024 if n >= 1024 else _round_up(n, 128)
    return tn, td, _round_up(n, tn)


def _edge_tiles(e):
    """Returns (edge tile, padded edge count)."""
    e = max(int(e), 1)
    if e < 1024:
        t = _round_up(e, 8)
        return t, t
    return 1024, _round_up(e, 1024)


def _pad_rows(x, rows, fill=0):
    pad = rows - x.shape[0]
    if pad <= 0:
        return x
    pad_block = jnp.full((pad,) + x.shape[1:], fill, dtype=x.dtype)
    return jnp.concatenate([x, pad_block], axis=0)


def _vmem_limit(*nbytes):
    """2x (double buffering) over block footprints + headroom, capped for v7x."""
    need = 2 * sum(int(b) for b in nbytes) + (8 << 20)
    return int(min(max(need, 16 << 20), 40 << 20))


# ----------------------------- Pallas kernels ------------------------------

def _linear_kernel(x_ref, w_ref, b_ref, o_ref):
    # bf16 MXU operands, f32 accumulation.
    o_ref[...] = jnp.dot(x_ref[...].astype(jnp.bfloat16), w_ref[...],
                         preferred_element_type=jnp.float32) + b_ref[...]


def pallas_linear(x, w_bf16, b, row_tile):
    m, k = x.shape
    n = w_bf16.shape[1]
    assert m % row_tile == 0
    limit = _vmem_limit(row_tile * k * 4, k * n * 2, n * 4, row_tile * n * 4)
    return pl.pallas_call(
        _linear_kernel,
        out_shape=jax.ShapeDtypeStruct((m, n), jnp.float32),
        grid=(m // row_tile,),
        in_specs=[
            pl.BlockSpec((row_tile, k), lambda i: (i, 0)),
            pl.BlockSpec((k, n), lambda i: (0, 0)),
            pl.BlockSpec((1, n), lambda i: (0, 0)),
        ],
        out_specs=pl.BlockSpec((row_tile, n), lambda i: (i, 0)),
        compiler_params=pltpu.CompilerParams(
            dimension_semantics=("parallel",), vmem_limit_bytes=limit),
    )(x, w_bf16, b.reshape(1, n).astype(jnp.float32))


def _enc_proj_kernel(x_ref, w1_ref, b1_ref, w2_ref, b2_ref, o_ref):
    # layer-0 fusion: relu(feat @ W_enc + b) @ W_proj + b_proj (h never hits HBM)
    h = jnp.dot(x_ref[...].astype(jnp.bfloat16), w1_ref[...],
                preferred_element_type=jnp.float32) + b1_ref[...]
    h = jnp.maximum(h, 0.0)
    o_ref[...] = jnp.dot(h.astype(jnp.bfloat16), w2_ref[...],
                         preferred_element_type=jnp.float32) + b2_ref[...]


def pallas_enc_projection(x, w1_bf16, b1, w2_bf16, b2, row_tile):
    m, k = x.shape
    mid = w1_bf16.shape[1]
    n = w2_bf16.shape[1]
    assert m % row_tile == 0
    limit = _vmem_limit(row_tile * k * 4, k * mid * 2, mid * 4,
                        mid * n * 2, n * 4, row_tile * n * 4)
    return pl.pallas_call(
        _enc_proj_kernel,
        out_shape=jax.ShapeDtypeStruct((m, n), jnp.float32),
        grid=(m // row_tile,),
        in_specs=[
            pl.BlockSpec((row_tile, k), lambda i: (i, 0)),
            pl.BlockSpec((k, mid), lambda i: (0, 0)),
            pl.BlockSpec((1, mid), lambda i: (0, 0)),
            pl.BlockSpec((mid, n), lambda i: (0, 0)),
            pl.BlockSpec((1, n), lambda i: (0, 0)),
        ],
        out_specs=pl.BlockSpec((row_tile, n), lambda i: (i, 0)),
        compiler_params=pltpu.CompilerParams(
            dimension_semantics=("parallel",), vmem_limit_bytes=limit),
    )(x, w1_bf16, b1.reshape(1, mid).astype(jnp.float32),
      w2_bf16, b2.reshape(1, n).astype(jnp.float32))


def _edge_slab_kernel(nslab_ref, ef_ref, we_ref, be_ref, wa_ref, o_ref,
                      *, hf, n_heads, sw):
    # edge_encoder + ReLU + attn_edge_fc fused; output is the lane-dense bf16
    # per-edge slab [feat_src_fc[src] | attn_src+attn_dst+attn_edge | zero pad].
    emb = jnp.dot(ef_ref[...].astype(jnp.bfloat16), we_ref[...],
                  preferred_element_type=jnp.float32) + be_ref[...]
    emb = jnp.maximum(emb, 0.0)
    attn_edge = jnp.dot(emb.astype(jnp.bfloat16), wa_ref[...],
                        preferred_element_type=jnp.float32)          # (te, H)
    nslab = nslab_ref[...]                                           # (te, hf+H) bf16
    feat_e = nslab[:, :hf]
    e = nslab[:, hf:hf + n_heads].astype(jnp.float32) + attn_edge
    pieces = [feat_e, e.astype(jnp.bfloat16)]
    pad = sw - (hf + n_heads)
    if pad > 0:
        pieces.append(jnp.zeros((nslab.shape[0], pad), jnp.bfloat16))
    o_ref[...] = jnp.concatenate(pieces, axis=1)


def pallas_edge_slab(node_slab, efeat_s, enc_w_bf16, enc_b, attn_w_bf16,
                     te, hf, n_heads, sw):
    e_pad, nsw = node_slab.shape
    ef = efeat_s.shape[1]
    ee = enc_w_bf16.shape[1]
    assert e_pad % te == 0
    kern = functools.partial(_edge_slab_kernel, hf=hf, n_heads=n_heads, sw=sw)
    limit = _vmem_limit(te * nsw * 2, te * ef * 4, ef * ee * 2, ee * 4,
                        ee * n_heads * 2, te * sw * 2)
    return pl.pallas_call(
        kern,
        out_shape=jax.ShapeDtypeStruct((e_pad, sw), jnp.bfloat16),
        grid=(e_pad // te,),
        in_specs=[
            pl.BlockSpec((te, nsw), lambda i: (i, 0)),
            pl.BlockSpec((te, ef), lambda i: (i, 0)),
            pl.BlockSpec((ef, ee), lambda i: (0, 0)),
            pl.BlockSpec((1, ee), lambda i: (0, 0)),
            pl.BlockSpec((ee, n_heads), lambda i: (0, 0)),
        ],
        out_specs=pl.BlockSpec((te, sw), lambda i: (i, 0)),
        compiler_params=pltpu.CompilerParams(
            dimension_semantics=("parallel",), vmem_limit_bytes=limit),
    )(node_slab, efeat_s, enc_w_bf16, enc_b.reshape(1, ee).astype(jnp.float32),
      attn_w_bf16)


def _agg_kernel(wt_ref, we_ref, isf_ref, val_ref,        # scalar prefetch (SMEM)
                dstrow_ref, eslab_ref, expand_ref,        # VMEM inputs
                out_ref,                                  # VMEM output (resident acc)
                *, td, n_heads, hf, slope):
    """One (dst_tile, edge_tile) work item of the sparse attention aggregation."""
    w = pl.program_id(0)

    @pl.when(isf_ref[w] == 1)
    def _init():
        out_ref[...] = jnp.zeros_like(out_ref)

    @pl.when(val_ref[w] == 1)
    def _accumulate():
        te = eslab_ref.shape[0]
        base = wt_ref[w] * td
        # selector built directly pre-transposed: (td, te), no XLU transpose
        dst_local = dstrow_ref[0:1, :] - base                        # (1, te) int32
        d_iota = lax.broadcasted_iota(jnp.int32, (td, te), 0)
        sel_t = (d_iota == dst_local).astype(jnp.bfloat16)           # (td, te)

        slab = eslab_ref[...]                                        # (te, sw) bf16
        feat_e = slab[:, :hf]
        e = slab[:, hf:hf + n_heads].astype(jnp.float32)
        a = jnp.where(e >= 0, e, slope * e)      # LeakyReLU; 'none_softmax' -> a = e
        # broadcast per-head attention across out_feats lanes via a tiny MXU matmul
        a_wide = jnp.dot(a.astype(jnp.bfloat16), expand_ref[...],
                         preferred_element_type=jnp.float32)         # (te, hf)
        msg = (feat_e.astype(jnp.float32) * a_wide).astype(jnp.bfloat16)
        # scatter-add (u_mul_e + sum) into the resident output block
        out_ref[...] += jnp.dot(sel_t, msg, preferred_element_type=jnp.float32)


def _build_schedule(dst_sorted, n_pad, e_pad, td, te):
    """Staircase (dst_tile, edge_tile) work list from dst-sorted edges."""
    ndt = n_pad // td
    net = e_pad // te
    t = jnp.arange(ndt, dtype=jnp.int32)
    lo = jnp.searchsorted(dst_sorted, t * td, side="left").astype(jnp.int32)
    hi = jnp.searchsorted(dst_sorted, (t + 1) * td, side="left").astype(jnp.int32)
    first_et = jnp.clip(lo // te, 0, net - 1)
    last_et = jnp.where(hi > lo, jnp.clip((hi - 1) // te, 0, net - 1), first_et)
    counts = (last_et - first_et + 1).astype(jnp.int32)
    ends = jnp.cumsum(counts)
    starts = ends - counts
    total = ends[-1]

    n_work = ndt + net                      # static upper bound (staircase)
    w = jnp.arange(n_work, dtype=jnp.int32)
    wt = jnp.clip(jnp.searchsorted(ends, w, side="right"), 0, ndt - 1).astype(jnp.int32)
    valid = w < total
    we = jnp.clip(first_et[wt] + (w - starts[wt]), 0, net - 1)
    we = jnp.where(valid, we, net - 1).astype(jnp.int32)
    is_first = (valid & (w == starts[wt])).astype(jnp.int32)
    return wt, we, is_first, valid.astype(jnp.int32), n_work


def pallas_sparse_aggregate(dst_rows, eslab, expand_bf16, wt, we, isf, val,
                            n_work, td, te, hf, n_heads, n_pad, sw):
    """agg[d] = sum_{edges s->d} leaky_relu(as[s]+ad[d]+ae) * feat_src_fc[s]."""
    kern = functools.partial(_agg_kernel, td=td, n_heads=n_heads, hf=hf,
                             slope=LEAKY_SLOPE)
    flops = 2 * n_work * te * hf * (td + n_heads)
    bytes_accessed = n_work * (te * sw * 2 + 8 * te * 4 + td * hf * 4)
    limit = _vmem_limit(8 * te * 4, te * sw * 2, n_heads * hf * 2, td * hf * 4,
                        td * te * 2, 3 * te * hf * 4)   # incl. in-kernel intermediates

    grid_spec = pltpu.PrefetchScalarGridSpec(
        num_scalar_prefetch=4,
        grid=(n_work,),
        in_specs=[
            pl.BlockSpec((8, te), lambda w, wt, we, f, v: (0, we[w])),
            pl.BlockSpec((te, sw), lambda w, wt, we, f, v: (we[w], 0)),
            pl.BlockSpec((n_heads, hf), lambda w, wt, we, f, v: (0, 0)),
        ],
        out_specs=pl.BlockSpec((td, hf), lambda w, wt, we, f, v: (wt[w], 0)),
    )
    # TODO(synk): on v7x, split dst tiles into a leading size-2 'parallel' grid
    # axis (per-core work lists) so both TensorCores run the aggregation.
    return pl.pallas_call(
        kern,
        out_shape=jax.ShapeDtypeStruct((n_pad, hf), jnp.float32),
        grid_spec=grid_spec,
        compiler_params=pltpu.CompilerParams(
            dimension_semantics=("arbitrary",), vmem_limit_bytes=limit),
        cost_estimate=pl.CostEstimate(flops=int(flops), transcendentals=0,
                                      bytes_accessed=int(bytes_accessed)),
    )(wt, we, isf, val, dst_rows, eslab, expand_bf16)


def _epilogue_kernel(agg_ref, dstfc_ref, hlast_ref, hm_ref, w_ref, b_ref,
                     scale_ref, offset_ref, *rest, inv_bn_std, with_pred):
    # agg_func per-(node, head) normalization done lane-dense: hm is the
    # per-head averaging matrix, so agg @ hm broadcasts the head mean over lanes.
    agg = agg_ref[...]
    hm = hm_ref[...]
    mean = jnp.dot(agg.astype(jnp.bfloat16), hm, preferred_element_type=jnp.float32)
    cent = agg - mean
    var = jnp.dot((cent * cent).astype(jnp.bfloat16), hm,
                  preferred_element_type=jnp.float32) + AGG_EPS
    normed = cent * lax.rsqrt(var) * scale_ref[...] + offset_ref[...]
    # agg_fc, + dst_fc (conv activation is None), residual, eval-BN, ReLU
    agg_msg = jnp.dot(normed.astype(jnp.bfloat16), w_ref[...],
                      preferred_element_type=jnp.float32) + b_ref[...]
    h_sum = agg_msg + dstfc_ref[...] + hlast_ref[...]
    h_act = jnp.maximum(h_sum * inv_bn_std, 0.0)
    if with_pred:
        pw_ref, pb_ref, out_ref = rest
        out_ref[...] = jnp.dot(h_act.astype(jnp.bfloat16), pw_ref[...],
                               preferred_element_type=jnp.float32) + pb_ref[...]
    else:
        hsum_ref, hact_ref = rest
        hsum_ref[...] = h_sum
        hact_ref[...] = h_act


def pallas_epilogue(agg, dst_fc, h_last, pc, headmean_bf16, row_tile,
                    pred_w=None, pred_b=None):
    n, hf = agg.shape
    assert n % row_tile == 0
    with_pred = pred_w is not None
    kern = functools.partial(_epilogue_kernel,
                             inv_bn_std=1.0 / math.sqrt(1.0 + BN_EPS),
                             with_pred=with_pred)
    rows = lambda i: (i, 0)
    full = lambda i: (0, 0)
    in_specs = [
        pl.BlockSpec((row_tile, hf), rows),
        pl.BlockSpec((row_tile, hf), rows),
        pl.BlockSpec((row_tile, hf), rows),
        pl.BlockSpec((hf, hf), full),
        pl.BlockSpec((hf, hf), full),
        pl.BlockSpec((1, hf), full),
        pl.BlockSpec((1, hf), full),
        pl.BlockSpec((1, hf), full),
    ]
    args = [agg, dst_fc, h_last, headmean_bf16,
            pc["agg_fc_w"].astype(jnp.bfloat16),
            pc["agg_fc_b"].reshape(1, hf).astype(jnp.float32),
            pc["scale"].reshape(1, hf).astype(jnp.float32),
            pc["offset"].reshape(1, hf).astype(jnp.float32)]
    block_bytes = [3 * row_tile * hf * 4, 2 * hf * hf * 2, 3 * hf * 4]
    if with_pred:
        nc = pred_w.shape[1]
        in_specs += [pl.BlockSpec((hf, nc), full), pl.BlockSpec((1, nc), full)]
        args += [pred_w.astype(jnp.bfloat16),
                 pred_b.reshape(1, nc).astype(jnp.float32)]
        out_shape = jax.ShapeDtypeStruct((n, nc), jnp.float32)
        out_specs = pl.BlockSpec((row_tile, nc), rows)
        block_bytes += [hf * nc * 2, nc * 4, row_tile * nc * 4]
    else:
        out_shape = (jax.ShapeDtypeStruct((n, hf), jnp.float32),
                     jax.ShapeDtypeStruct((n, hf), jnp.float32))
        out_specs = (pl.BlockSpec((row_tile, hf), rows),
                     pl.BlockSpec((row_tile, hf), rows))
        block_bytes += [2 * row_tile * hf * 4]
    return pl.pallas_call(
        kern,
        out_shape=out_shape,
        grid=(n // row_tile,),
        in_specs=in_specs,
        out_specs=out_specs,
        compiler_params=pltpu.CompilerParams(
            dimension_semantics=("parallel",),
            vmem_limit_bytes=_vmem_limit(*block_bytes)),
    )(*args)


# --------------------------- parameter construction ------------------------

def _xavier_normal(key, fan_in, fan_out, gain):
    std = gain * math.sqrt(2.0 / (fan_in + fan_out))
    # stored as (in, out) so kernels compute x @ W directly
    return jax.random.normal(key, (fan_in, fan_out), jnp.float32) * std


def init_params(key, cfg):
    gain = math.sqrt(2.0)  # nn.init.calculate_gain('relu')
    keys = iter(jax.random.split(key, 64))
    nf, ef, nc = cfg["node_feats"], cfg["edge_feats"], cfg["n_classes"]
    L, H = cfg["n_layers"], cfg["n_heads"]
    nh, fh, ee = cfg["n_hidden"], cfg["first_hidden"], cfg["edge_emb"]

    params = {
        "node_encoder_w": _xavier_normal(next(keys), nf, fh, 1.0),
        "node_encoder_b": jnp.zeros((fh,), jnp.float32),
        "edge_enc_w": [], "edge_enc_b": [], "convs": [],
        "pred_w": _xavier_normal(next(keys), H * nh, nc, 1.0),
        "pred_b": jnp.zeros((nc,), jnp.float32),
    }
    for i in range(L):
        in_hidden = fh if i == 0 else H * nh
        params["edge_enc_w"].append(_xavier_normal(next(keys), ef, ee, 1.0))
        params["edge_enc_b"].append(jnp.zeros((ee,), jnp.float32))
        params["convs"].append({
            "src_fc_w": _xavier_normal(next(keys), in_hidden, nh * H, gain),
            "attn_src_w": _xavier_normal(next(keys), in_hidden, H, gain),
            "attn_dst_w": _xavier_normal(next(keys), in_hidden, H, gain),
            "attn_edge_w": _xavier_normal(next(keys), ee, H, gain),
            "agg_fc_w": _xavier_normal(next(keys), nh * H, nh * H, gain),
            "agg_fc_b": jnp.zeros((nh * H,), jnp.float32),
            "dst_fc_w": _xavier_normal(next(keys), in_hidden, nh * H, gain),
            "dst_fc_b": jnp.zeros((nh * H,), jnp.float32),
            "scale": jnp.ones((1, H, nh), jnp.float32),
            "offset": jnp.zeros((1, H, nh), jnp.float32),
        })
    return params


# ------------------------------- forward pass ------------------------------

def _cat_proj_weights(pc, hf, n_heads, pw):
    """Lane-padded fused projection slab [src_fc | attn_src | attn_dst | dst_fc | 0]."""
    w_cat = jnp.concatenate([pc["src_fc_w"], pc["attn_src_w"],
                             pc["attn_dst_w"], pc["dst_fc_w"]], axis=1)
    b_cat = jnp.concatenate(
        [jnp.zeros((hf + 2 * n_heads,), jnp.float32), pc["dst_fc_b"]], axis=0)
    pad = pw - w_cat.shape[1]
    if pad > 0:
        w_cat = jnp.pad(w_cat, ((0, 0), (0, pad)))
        b_cat = jnp.pad(b_cat, ((0, pad),))
    return w_cat.astype(jnp.bfloat16), b_cat


def gipa_wide_forward(params, feat, efeat, src, dst, cfg):
    L, H, nh = cfg["n_layers"], cfg["n_heads"], cfg["n_hidden"]
    hf = H * nh
    N, E = feat.shape[0], src.shape[0]

    tn, td, n_pad = _node_tiles(N)
    te, e_pad = _edge_tiles(E)
    sw = _round_up(hf + H, 128)          # per-edge slab width (lane dense)
    pw = _round_up(2 * hf + 2 * H, 128)  # projection slab width (lane dense)

    # sort edges by destination (CSR grouping); pad with out-of-range sentinels
    order = jnp.argsort(dst)
    src_s = _pad_rows(src[order].astype(jnp.int32), e_pad, 0)
    dst_s = _pad_rows(dst[order].astype(jnp.int32), e_pad, n_pad)   # sentinel dst
    efeat_s = _pad_rows(efeat[order].astype(jnp.float32), e_pad, 0.0)
    feat_p = _pad_rows(feat.astype(jnp.float32), n_pad, 0.0)
    dst_clamped = jnp.minimum(dst_s, n_pad - 1)                     # safe gather index
    # dst indices, lane-major (8 replicated sublanes keep the (8,128) block rule)
    dst_rows = jnp.broadcast_to(dst_s[None, :], (8, e_pad))

    # schedule depends only on the sorted dst; build once
    wt, we, isf, val, n_work = _build_schedule(dst_s, n_pad, e_pad, td, te)

    # constant matrices (head broadcast / per-head mean), bf16 MXU operands
    expand = (jnp.arange(H, dtype=jnp.int32)[:, None] ==
              (jnp.arange(hf, dtype=jnp.int32)[None, :] // nh)).astype(jnp.bfloat16)
    k = jnp.arange(hf, dtype=jnp.int32)
    headmean = (((k[:, None] // nh) == (k[None, :] // nh)).astype(jnp.float32)
                / nh).astype(jnp.bfloat16)

    h = None
    h_last = jnp.zeros((n_pad, hf), jnp.float32)   # layer-0 residual is a no-op
    out = None
    for i in range(L):
        pc = params["convs"][i]
        w_cat, b_cat = _cat_proj_weights(pc, hf, H, pw)
        if i == 0:
            # node_encoder + ReLU fused into layer-0's projection (h never hits HBM)
            proj = pallas_enc_projection(
                feat_p, params["node_encoder_w"].astype(jnp.bfloat16),
                params["node_encoder_b"], w_cat, b_cat, tn)
        else:
            proj = pallas_linear(h, w_cat, b_cat, tn)
        feat_src_fc = proj[:, :hf]
        attn_src = proj[:, hf:hf + H]
        attn_dst = proj[:, hf + H:hf + 2 * H]
        dst_fc = proj[:, hf + 2 * H:2 * hf + 2 * H]

        # per-edge node slab (XLA gathers): [feat_src_fc[src] | attn_src[src]+attn_dst[dst]]
        g_src = jnp.take(jnp.concatenate([feat_src_fc, attn_src], axis=1),
                         src_s, axis=0)
        g_dst = jnp.take(attn_dst, dst_clamped, axis=0)
        node_slab = jnp.concatenate([g_src[:, :hf], g_src[:, hf:] + g_dst],
                                    axis=1).astype(jnp.bfloat16)

        # fused edge path: edge_encoder[i] + ReLU + attn_edge_fc + slab assembly
        eslab = pallas_edge_slab(node_slab, efeat_s,
                                 params["edge_enc_w"][i].astype(jnp.bfloat16),
                                 params["edge_enc_b"][i],
                                 pc["attn_edge_w"].astype(jnp.bfloat16),
                                 te, hf, H, sw)

        # sparse per-destination aggregation (work-list scheduled scatter-add)
        agg = pallas_sparse_aggregate(dst_rows, eslab, expand, wt, we, isf, val,
                                      n_work, td, te, hf, H, n_pad, sw)

        # fused epilogue: per-head norm + agg_fc + dst_fc + residual + eval-BN + ReLU
        if i == L - 1:
            # final pred linear folded into the last epilogue
            out = pallas_epilogue(agg, dst_fc, h_last, pc, headmean, tn,
                                  pred_w=params["pred_w"], pred_b=params["pred_b"])
        else:
            h_sum, h_act = pallas_epilogue(agg, dst_fc, h_last, pc, headmean, tn)
            h_last = h_sum
            h = h_act
        # TODO(synk): dropout / edge_drop layers are identity in eval mode.
        # TODO(synk): eval BatchNorm assumes fresh running stats (mean 0, var 1);
        # plumb trained running stats through the epilogue if they are loaded.

    return out[:N]


# ----------------------------------- main -----------------------------------

if __name__ == "__main__":
    cfg = dict(node_feats=12, edge_feats=6, n_classes=5, n_layers=2,
               n_heads=2, n_hidden=8, edge_emb=4, first_hidden=16)
    N, E = 8, 16

    key = jax.random.PRNGKey(0)
    kp, kf, ke, ks, kd = jax.random.split(key, 5)
    params = init_params(kp, cfg)
    feat = jax.random.normal(kf, (N, cfg["node_feats"]), jnp.float32)
    efeat = jax.random.normal(ke, (E, cfg["edge_feats"]), jnp.float32)
    src = jax.random.randint(ks, (E,), 0, N, jnp.int32)
    dst = jax.random.randint(kd, (E,), 0, N, jnp.int32)

    fwd = jax.jit(functools.partial(gipa_wide_forward, cfg=cfg))
    out = fwd(params, feat, efeat, src, dst)
    jax.block_until_ready(out)
    assert out.shape == (N, cfg["n_classes"])
    assert bool(jnp.all(jnp.isfinite(out)))
    print("KERNEL_OK")
</pallas_src>

<mosaic_0001>
module attributes {stable_mosaic.version = 11 : i64} {
  func.func @_enc_proj_kernel(%arg0: i32, %arg1: memref<8x12xf32, #tpu.memory_space<vmem>>, %arg2: memref<12x16xbf16, #tpu.memory_space<vmem>>, %arg3: memref<1x16xf32, #tpu.memory_space<vmem>>, %arg4: memref<16x128xbf16, #tpu.memory_space<vmem>>, %arg5: memref<1x128xf32, #tpu.memory_space<vmem>>, %arg6: memref<8x128xf32, #tpu.memory_space<vmem>>) attributes {dimension_semantics = [#tpu.dimension_semantics<parallel>], iteration_bounds = array<i64: 1>, scalar_prefetch = 0 : i64, scratch_operands = 0 : i64, tpu.core_type = #tpu.core_type<tc>, window_params = [{transform_indices = @transform_0, window_bounds = array<i64: 8, 12>}, {pipeline_mode = #tpu.pipeline_mode<synchronous>, transform_indices = @transform_1, window_bounds = array<i64: 12, 16>}, {pipeline_mode = #tpu.pipeline_mode<synchronous>, transform_indices = @transform_2, window_bounds = array<i64: 1, 16>}, {pipeline_mode = #tpu.pipeline_mode<synchronous>, transform_indices = @transform_3, window_bounds = array<i64: 16, 128>}, {pipeline_mode = #tpu.pipeline_mode<synchronous>, transform_indices = @transform_4, window_bounds = array<i64: 1, 128>}, {transform_indices = @transform_5, window_bounds = array<i64: 8, 128>}]} {
    %c0 = arith.constant 0 : index
    %c0_0 = arith.constant 0 : index
    %0 = vector.load %arg1[%c0, %c0_0] : memref<8x12xf32, #tpu.memory_space<vmem>>, vector<8x12xf32>
    %1 = arith.truncf %0 : vector<8x12xf32> to vector<8x12xbf16>
    %c0_1 = arith.constant 0 : index
    %c0_2 = arith.constant 0 : index
    %2 = vector.load %arg2[%c0_1, %c0_2] : memref<12x16xbf16, #tpu.memory_space<vmem>>, vector<12x16xbf16>
    %cst = arith.constant dense<0.000000e+00> : vector<8x16xf32>
    %3 = tpu.matmul %1, %2, %cst {dimension_numbers = #tpu.dot_dimension_numbers<[1], [0], [0], [1], [0, 0, 1, 1], [], []>} : vector<8x12xbf16>, vector<12x16xbf16>, vector<8x16xf32> -> vector<8x16xf32>
    %c0_3 = arith.constant 0 : index
    %c0_4 = arith.constant 0 : index
    %4 = vector.load %arg3[%c0_3, %c0_4] : memref<1x16xf32, #tpu.memory_space<vmem>>, vector<1x16xf32>
    %5 = vector.broadcast %4 : vector<1x16xf32> to vector<8x16xf32>
    %6 = arith.addf %3, %5 : vector<8x16xf32>
    %cst_5 = arith.constant 0.000000e+00 : f32
    %7 = vector.broadcast %cst_5 : f32 to vector<8x16xf32>
    %8 = arith.maximumf %6, %7 : vector<8x16xf32>
    %9 = arith.truncf %8 : vector<8x16xf32> to vector<8x16xbf16>
    %c0_6 = arith.constant 0 : index
    %c0_7 = arith.constant 0 : index
    %10 = vector.load %arg4[%c0_6, %c0_7] : memref<16x128xbf16, #tpu.memory_space<vmem>>, vector<16x128xbf16>
    %cst_8 = arith.constant dense<0.000000e+00> : vector<8x128xf32>
    %11 = tpu.matmul %9, %10, %cst_8 {dimension_numbers = #tpu.dot_dimension_numbers<[1], [0], [0], [1], [0, 0, 1, 1], [], []>} : vector<8x16xbf16>, vector<16x128xbf16>, vector<8x128xf32> -> vector<8x128xf32>
    %c0_9 = arith.constant 0 : index
    %c0_10 = arith.constant 0 : index
    %12 = vector.load %arg5[%c0_9, %c0_10] : memref<1x128xf32, #tpu.memory_space<vmem>>, vector<1x128xf32>
    %13 = vector.broadcast %12 : vector<1x128xf32> to vector<8x128xf32>
    %14 = arith.addf %11, %13 : vector<8x128xf32>
    %c0_11 = arith.constant 0 : index
    %c0_12 = arith.constant 0 : index
    %15 = vector.load %arg6[%c0_11, %c0_12] : memref<8x128xf32, #tpu.memory_space<vmem>>, vector<8x128xf32>
    tpu.vector_store %arg6[%c0_11, %c0_12], %14 {strides = array<i32>} : memref<8x128xf32, #tpu.memory_space<vmem>>, vector<8x128xf32>,
    return
  }
  func.func @transform_0(%arg0: i32) -> (i32, i32) {
    %c0_i32 = arith.constant 0 : i32
    %c0_i32_0 = arith.constant 0 : i32
    return %arg0, %c0_i32 : i32, i32
  }
  func.func @transform_1(%arg0: i32) -> (i32, i32) {
    %c0_i32 = arith.constant 0 : i32
    %c0_i32_0 = arith.constant 0 : i32
    %c0_i32_1 = arith.constant 0 : i32
    return %c0_i32, %c0_i32_0 : i32, i32
  }
  func.func @transform_2(%arg0: i32) -> (i32, i32) {
    %c0_i32 = arith.constant 0 : i32
    %c0_i32_0 = arith.constant 0 : i32
    %c0_i32_1 = arith.constant 0 : i32
    return %c0_i32, %c0_i32_0 : i32, i32
  }
  func.func @transform_3(%arg0: i32) -> (i32, i32) {
    %c0_i32 = arith.constant 0 : i32
    %c0_i32_0 = arith.constant 0 : i32
    %c0_i32_1 = arith.constant 0 : i32
    return %c0_i32, %c0_i32_0 : i32, i32
  }
  func.func @transform_4(%arg0: i32) -> (i32, i32) {
    %c0_i32 = arith.constant 0 : i32
    %c0_i32_0 = arith.constant 0 : i32
    %c0_i32_1 = arith.constant 0 : i32
    return %c0_i32, %c0_i32_0 : i32, i32
  }
  func.func @transform_5(%arg0: i32) -> (i32, i32) {
    %c0_i32 = arith.constant 0 : i32
    %c0_i32_0 = arith.constant 0 : i32
    return %arg0, %c0_i32 : i32, i32
  }
}

module attributes {stable_mosaic.version = 11 : i64} {
  func.func @_agg_kernel(%arg0: i32, %arg1: memref<2xi32, #tpu.memory_space<smem>>, %arg2: memref<2xi32, #tpu.memory_space<smem>>, %arg3: memref<2xi32, #tpu.memory_space<smem>>, %arg4: memref<2xi32, #tpu.memory_space<smem>>, %arg5: memref<8x16xi32, #tpu.memory_space<vmem>>, %arg6: memref<16x128xbf16, #tpu.memory_space<vmem>>, %arg7: memref<2x16xbf16, #tpu.memory_space<vmem>>, %arg8: memref<8x16xf32, #tpu.memory_space<vmem>>) attributes {dimension_semantics = [#tpu.dimension_semantics<arbitrary>], iteration_bounds = array<i64: 2>, scalar_prefetch = 4 : i64, scratch_operands = 0 : i64, tpu.core_type = #tpu.core_type<tc>, window_params = [{transform_indices = @transform_0, window_bounds = array<i64: 8, 16>}, {transform_indices = @transform_1, window_bounds = array<i64: 16, 128>}, {pipeline_mode = #tpu.pipeline_mode<synchronous>, transform_indices = @transform_2, window_bounds = array<i64: 2, 16>}, {transform_indices = @transform_3, window_bounds = array<i64: 8, 16>}]} {
    %0 = arith.index_cast %arg0 : i32 to index
    %1 = memref.load %arg3[%0] : memref<2xi32, #tpu.memory_space<smem>>
    %c1_i32 = arith.constant 1 : i32
    %2 = arith.cmpi eq, %1, %c1_i32 : i32
    %3 = arith.extui %2 : i1 to i32
    %c0_i32 = arith.constant 0 : i32
    %4 = arith.cmpi ne, %3, %c0_i32 : i32
    scf.if %4 {
      %cst = arith.constant 0.000000e+00 : f32
      %10 = vector.broadcast %cst : f32 to vector<8x16xf32>
      %c0 = arith.constant 0 : index
      %c0_2 = arith.constant 0 : index
      %11 = vector.load %arg8[%c0, %c0_2] : memref<8x16xf32, #tpu.memory_space<vmem>>, vector<8x16xf32>
      tpu.vector_store %arg8[%c0, %c0_2], %10 {strides = array<i32>} : memref<8x16xf32, #tpu.memory_space<vmem>>, vector<8x16xf32>,
    } else {
    }
    %5 = arith.index_cast %arg0 : i32 to index
    %6 = memref.load %arg4[%5] : memref<2xi32, #tpu.memory_space<smem>>
    %c1_i32_0 = arith.constant 1 : i32
    %7 = arith.cmpi eq, %6, %c1_i32_0 : i32
    %8 = arith.extui %7 : i1 to i32
    %c0_i32_1 = arith.constant 0 : i32
    %9 = arith.cmpi ne, %8, %c0_i32_1 : i32
    scf.if %9 {
      %10 = arith.index_cast %arg0 : i32 to index
      %11 = memref.load %arg1[%10] : memref<2xi32, #tpu.memory_space<smem>>
      %c8_i32 = arith.constant 8 : i32
      %12 = arith.muli %11, %c8_i32 : i32
      %c0 = arith.constant 0 : index
      %c0_2 = arith.constant 0 : index
      %13 = vector.load %arg5[%c0, %c0_2] : memref<8x16xi32, #tpu.memory_space<vmem>>, vector<1x16xi32>
      %14 = vector.broadcast %12 : i32 to vector<1x16xi32>
      %15 = arith.subi %13, %14 : vector<1x16xi32>
      %16 = tpu.iota {dimensions = array<i32: 0>} : vector<8x16xi32>
      %17 = vector.broadcast %15 : vector<1x16xi32> to vector<8x16xi32>
      %18 = arith.cmpi eq, %16, %17 : vector<8x16xi32>
      %19 = arith.extui %18 : vector<8x16xi1> to vector<8x16xi32>
      %20 = arith.sitofp %19 : vector<8x16xi32> to vector<8x16xf32>
      %21 = arith.truncf %20 : vector<8x16xf32> to vector<8x16xbf16>
      %c0_3 = arith.constant 0 : index
      %c0_4 = arith.constant 0 : index
      %22 = vector.load %arg6[%c0_3, %c0_4] : memref<16x128xbf16, #tpu.memory_space<vmem>>, vector<16x128xbf16>
      %23 = vector.extract_strided_slice %22 {offsets = [0, 0], sizes = [16, 16], strides = [1, 1]} : vector<16x128xbf16> to vector<16x16xbf16>
      %24 = vector.extract_strided_slice %22 {offsets = [0, 16], sizes = [16, 2], strides = [1, 1]} : vector<16x128xbf16> to vector<16x2xbf16>
      %25 = arith.extf %24 : vector<16x2xbf16> to vector<16x2xf32>
      %cst = arith.constant 0.000000e+00 : f32
      %26 = vector.broadcast %cst : f32 to vector<16x2xf32>
      %27 = arith.cmpf oge, %25, %26 : vector<16x2xf32>
      %cst_5 = arith.constant 2.000000e-01 : f32
      %28 = vector.broadcast %cst_5 : f32 to vector<16x2xf32>
      %29 = arith.mulf %28, %25 : vector<16x2xf32>
      %30 = arith.select %27, %25, %29 : vector<16x2xi1>, vector<16x2xf32>
      %31 = arith.truncf %30 : vector<16x2xf32> to vector<16x2xbf16>
      %c0_6 = arith.constant 0 : index
      %c0_7 = arith.constant 0 : index
      %32 = vector.load %arg7[%c0_6, %c0_7] : memref<2x16xbf16, #tpu.memory_space<vmem>>, vector<2x16xbf16>
      %cst_8 = arith.constant dense<0.000000e+00> : vector<16x16xf32>
      %33 = tpu.matmul %31, %32, %cst_8 {dimension_numbers = #tpu.dot_dimension_numbers<[1], [0], [0], [1], [0, 0, 1, 1], [], []>} : vector<16x2xbf16>, vector<2x16xbf16>, vector<16x16xf32> -> vector<16x16xf32>
      %34 = arith.extf %23 : vector<16x16xbf16> to vector<16x16xf32>
      %35 = arith.mulf %34, %33 : vector<16x16xf32>
      %36 = arith.truncf %35 : vector<16x16xf32> to vector<16x16xbf16>
      %c0_9 = arith.constant 0 : index
      %c0_10 = arith.constant 0 : index
      %37 = vector.load %arg8[%c0_9, %c0_10] : memref<8x16xf32, #tpu.memory_space<vmem>>, vector<8x16xf32>
      %cst_11 = arith.constant dense<0.000000e+00> : vector<8x16xf32>
      %38 = tpu.matmul %21, %36, %cst_11 {dimension_numbers = #tpu.dot_dimension_numbers<[1], [0], [0], [1], [0, 0, 1, 1], [], []>} : vector<8x16xbf16>, vector<16x16xbf16>, vector<8x16xf32> -> vector<8x16xf32>
      %39 = arith.addf %37, %38 : vector<8x16xf32>
      %c0_12 = arith.constant 0 : index
      %c0_13 = arith.constant 0 : index
      %40 = vector.load %arg8[%c0_12, %c0_13] : memref<8x16xf32, #tpu.memory_space<vmem>>, vector<8x16xf32>
      tpu.vector_store %arg8[%c0_12, %c0_13], %39 {strides = array<i32>} : memref<8x16xf32, #tpu.memory_space<vmem>>, vector<8x16xf32>,
    } else {
    }
    return
  }
  func.func @transform_0(%arg0: i32, %arg1: memref<2xi32, #tpu.memory_space<smem>>, %arg2: memref<2xi32, #tpu.memory_space<smem>>, %arg3: memref<2xi32, #tpu.memory_space<smem>>, %arg4: memref<2xi32, #tpu.memory_space<smem>>) -> (i32, i32) {
    %0 = arith.index_cast %arg0 : i32 to index
    %1 = memref.load %arg2[%0] : memref<2xi32, #tpu.memory_space<smem>>
    %c0_i32 = arith.constant 0 : i32
    %c0_i32_0 = arith.constant 0 : i32
    return %c0_i32, %1 : i32, i32
  }
  func.func @transform_1(%arg0: i32, %arg1: memref<2xi32, #tpu.memory_space<smem>>, %arg2: memref<2xi32, #tpu.memory_space<smem>>, %arg3: memref<2xi32, #tpu.memory_space<smem>>, %arg4: memref<2xi32, #tpu.memory_space<smem>>) -> (i32, i32) {
    %0 = arith.index_cast %arg0 : i32 to index
    %1 = memref.load %arg2[%0] : memref<2xi32, #tpu.memory_space<smem>>
    %c0_i32 = arith.constant 0 : i32
    %c0_i32_0 = arith.constant 0 : i32
    return %1, %c0_i32 : i32, i32
  }
  func.func @transform_2(%arg0: i32, %arg1: memref<2xi32, #tpu.memory_space<smem>>, %arg2: memref<2xi32, #tpu.memory_space<smem>>, %arg3: memref<2xi32, #tpu.memory_space<smem>>, %arg4: memref<2xi32, #tpu.memory_space<smem>>) -> (i32, i32) {
    %c0_i32 = arith.constant 0 : i32
    %c0_i32_0 = arith.constant 0 : i32
    %c0_i32_1 = arith.constant 0 : i32
    return %c0_i32, %c0_i32_0 : i32, i32
  }
  func.func @transform_3(%arg0: i32, %arg1: memref<2xi32, #tpu.memory_space<smem>>, %arg2: memref<2xi32, #tpu.memory_space<smem>>, %arg3: memref<2xi32, #tpu.memory_space<smem>>, %arg4: memref<2xi32, #tpu.memory_space<smem>>) -> (i32, i32) {
    %0 = arith.index_cast %arg0 : i32 to index
    %1 = memref.load %arg1[%0] : memref<2xi32, #tpu.memory_space<smem>>
    %c0_i32 = arith.constant 0 : i32
    %c0_i32_0 = arith.constant 0 : i32
    return %1, %c0_i32 : i32, i32
  }
}

module attributes {stable_mosaic.version = 11 : i64} {
  func.func @_edge_slab_kernel(%arg0: i32, %arg1: memref<16x18xbf16, #tpu.memory_space<vmem>>, %arg2: memref<16x6xf32, #tpu.memory_space<vmem>>, %arg3: memref<6x4xbf16, #tpu.memory_space<vmem>>, %arg4: memref<1x4xf32, #tpu.memory_space<vmem>>, %arg5: memref<4x2xbf16, #tpu.memory_space<vmem>>, %arg6: memref<16x128xbf16, #tpu.memory_space<vmem>>) attributes {dimension_semantics = [#tpu.dimension_semantics<parallel>], iteration_bounds = array<i64: 1>, scalar_prefetch = 0 : i64, scratch_operands = 0 : i64, tpu.core_type = #tpu.core_type<tc>, window_params = [{transform_indices = @transform_0, window_bounds = array<i64: 16, 18>}, {transform_indices = @transform_1, window_bounds = array<i64: 16, 6>}, {pipeline_mode = #tpu.pipeline_mode<synchronous>, transform_indices = @transform_2, window_bounds = array<i64: 6, 4>}, {pipeline_mode = #tpu.pipeline_mode<synchronous>, transform_indices = @transform_3, window_bounds = array<i64: 1, 4>}, {pipeline_mode = #tpu.pipeline_mode<synchronous>, transform_indices = @transform_4, window_bounds = array<i64: 4, 2>}, {transform_indices = @transform_5, window_bounds = array<i64: 16, 128>}]} {
    %c0 = arith.constant 0 : index
    %c0_0 = arith.constant 0 : index
    %0 = vector.load %arg2[%c0, %c0_0] : memref<16x6xf32, #tpu.memory_space<vmem>>, vector<16x6xf32>
    %1 = arith.truncf %0 : vector<16x6xf32> to vector<16x6xbf16>
    %c0_1 = arith.constant 0 : index
    %c0_2 = arith.constant 0 : index
    %2 = vector.load %arg3[%c0_1, %c0_2] : memref<6x4xbf16, #tpu.memory_space<vmem>>, vector<6x4xbf16>
    %cst = arith.constant dense<0.000000e+00> : vector<16x4xf32>
    %3 = tpu.matmul %1, %2, %cst {dimension_numbers = #tpu.dot_dimension_numbers<[1], [0], [0], [1], [0, 0, 1, 1], [], []>} : vector<16x6xbf16>, vector<6x4xbf16>, vector<16x4xf32> -> vector<16x4xf32>
    %c0_3 = arith.constant 0 : index
    %c0_4 = arith.constant 0 : index
    %4 = vector.load %arg4[%c0_3, %c0_4] : memref<1x4xf32, #tpu.memory_space<vmem>>, vector<1x4xf32>
    %5 = vector.broadcast %4 : vector<1x4xf32> to vector<16x4xf32>
    %6 = arith.addf %3, %5 : vector<16x4xf32>
    %cst_5 = arith.constant 0.000000e+00 : f32
    %7 = vector.broadcast %cst_5 : f32 to vector<16x4xf32>
    %8 = arith.maximumf %6, %7 : vector<16x4xf32>
    %9 = arith.truncf %8 : vector<16x4xf32> to vector<16x4xbf16>
    %c0_6 = arith.constant 0 : index
    %c0_7 = arith.constant 0 : index
    %10 = vector.load %arg5[%c0_6, %c0_7] : memref<4x2xbf16, #tpu.memory_space<vmem>>, vector<4x2xbf16>
    %cst_8 = arith.constant dense<0.000000e+00> : vector<16x2xf32>
    %11 = tpu.matmul %9, %10, %cst_8 {dimension_numbers = #tpu.dot_dimension_numbers<[1], [0], [0], [1], [0, 0, 1, 1], [], []>} : vector<16x4xbf16>, vector<4x2xbf16>, vector<16x2xf32> -> vector<16x2xf32>
    %c0_9 = arith.constant 0 : index
    %c0_10 = arith.constant 0 : index
    %12 = vector.load %arg1[%c0_9, %c0_10] : memref<16x18xbf16, #tpu.memory_space<vmem>>, vector<16x18xbf16>
    %13 = vector.extract_strided_slice %12 {offsets = [0, 0], sizes = [16, 16], strides = [1, 1]} : vector<16x18xbf16> to vector<16x16xbf16>
    %14 = vector.extract_strided_slice %12 {offsets = [0, 16], sizes = [16, 2], strides = [1, 1]} : vector<16x18xbf16> to vector<16x2xbf16>
    %15 = arith.extf %14 : vector<16x2xbf16> to vector<16x2xf32>
    %16 = arith.addf %15, %11 : vector<16x2xf32>
    %17 = arith.truncf %16 : vector<16x2xf32> to vector<16x2xbf16>
    %cst_11 = arith.constant 0.000000e+00 : bf16
    %18 = vector.broadcast %cst_11 : bf16 to vector<16x110xbf16>
    %19 = tpu.concatenate %13, %17, %18 in 1 : vector<16x16xbf16>, vector<16x2xbf16>, vector<16x110xbf16> -> vector<16x128xbf16>
    %c0_12 = arith.constant 0 : index
    %c0_13 = arith.constant 0 : index
    %20 = vector.load %arg6[%c0_12, %c0_13] : memref<16x128xbf16, #tpu.memory_space<vmem>>, vector<16x128xbf16>
    tpu.vector_store %arg6[%c0_12, %c0_13], %19 {strides = array<i32>} : memref<16x128xbf16, #tpu.memory_space<vmem>>, vector<16x128xbf16>,
    return
  }
  func.func @transform_0(%arg0: i32) -> (i32, i32) {
    %c0_i32 = arith.constant 0 : i32
    %c0_i32_0 = arith.constant 0 : i32
    return %arg0, %c0_i32 : i32, i32
  }
  func.func @transform_1(%arg0: i32) -> (i32, i32) {
    %c0_i32 = arith.constant 0 : i32
    %c0_i32_0 = arith.constant 0 : i32
    return %arg0, %c0_i32 : i32, i32
  }
  func.func @transform_2(%arg0: i32) -> (i32, i32) {
    %c0_i32 = arith.constant 0 : i32
    %c0_i32_0 = arith.constant 0 : i32
    %c0_i32_1 = arith.constant 0 : i32
    return %c0_i32, %c0_i32_0 : i32, i32
  }
  func.func @transform_3(%arg0: i32) -> (i32, i32) {
    %c0_i32 = arith.constant 0 : i32
    %c0_i32_0 = arith.constant 0 : i32
    %c0_i32_1 = arith.constant 0 : i32
    return %c0_i32, %c0_i32_0 : i32, i32
  }
  func.func @transform_4(%arg0: i32) -> (i32, i32) {
    %c0_i32 = arith.constant 0 : i32
    %c0_i32_0 = arith.constant 0 : i32
    %c0_i32_1 = arith.constant 0 : i32
    return %c0_i32, %c0_i32_0 : i32, i32
  }
  func.func @transform_5(%arg0: i32) -> (i32, i32) {
    %c0_i32 = arith.constant 0 : i32
    %c0_i32_0 = arith.constant 0 : i32
    return %arg0, %c0_i32 : i32, i32
  }
}

module attributes {stable_mosaic.version = 11 : i64} {
  func.func @_epilogue_kernel(%arg0: i32, %arg1: memref<8x16xf32, #tpu.memory_space<vmem>>, %arg2: memref<8x16xf32, #tpu.memory_space<vmem>>, %arg3: memref<8x16xf32, #tpu.memory_space<vmem>>, %arg4: memref<16x16xbf16, #tpu.memory_space<vmem>>, %arg5: memref<16x16xbf16, #tpu.memory_space<vmem>>, %arg6: memref<1x16xf32, #tpu.memory_space<vmem>>, %arg7: memref<1x16xf32, #tpu.memory_space<vmem>>, %arg8: memref<1x16xf32, #tpu.memory_space<vmem>>, %arg9: memref<8x16xf32, #tpu.memory_space<vmem>>, %arg10: memref<8x16xf32, #tpu.memory_space<vmem>>) attributes {dimension_semantics = [#tpu.dimension_semantics<parallel>], iteration_bounds = array<i64: 1>, scalar_prefetch = 0 : i64, scratch_operands = 0 : i64, tpu.core_type = #tpu.core_type<tc>, window_params = [{transform_indices = @transform_0, window_bounds = array<i64: 8, 16>}, {transform_indices = @transform_1, window_bounds = array<i64: 8, 16>}, {transform_indices = @transform_2, window_bounds = array<i64: 8, 16>}, {pipeline_mode = #tpu.pipeline_mode<synchronous>, transform_indices = @transform_3, window_bounds = array<i64: 16, 16>}, {pipeline_mode = #tpu.pipeline_mode<synchronous>, transform_indices = @transform_4, window_bounds = array<i64: 16, 16>}, {pipeline_mode = #tpu.pipeline_mode<synchronous>, transform_indices = @transform_5, window_bounds = array<i64: 1, 16>}, {pipeline_mode = #tpu.pipeline_mode<synchronous>, transform_indices = @transform_6, window_bounds = array<i64: 1, 16>}, {pipeline_mode = #tpu.pipeline_mode<synchronous>, transform_indices = @transform_7, window_bounds = array<i64: 1, 16>}, {transform_indices = @transform_8, window_bounds = array<i64: 8, 16>}, {transform_indices = @transform_9, window_bounds = array<i64: 8, 16>}]} {
    %c0 = arith.constant 0 : index
    %c0_0 = arith.constant 0 : index
    %0 = vector.load %arg1[%c0, %c0_0] : memref<8x16xf32, #tpu.memory_space<vmem>>, vector<8x16xf32>
    %c0_1 = arith.constant 0 : index
    %c0_2 = arith.constant 0 : index
    %1 = vector.load %arg4[%c0_1, %c0_2] : memref<16x16xbf16, #tpu.memory_space<vmem>>, vector<16x16xbf16>
    %2 = arith.truncf %0 : vector<8x16xf32> to vector<8x16xbf16>
    %cst = arith.constant dense<0.000000e+00> : vector<8x16xf32>
    %3 = tpu.matmul %2, %1, %cst {dimension_numbers = #tpu.dot_dimension_numbers<[1], [0], [0], [1], [0, 0, 1, 1], [], []>} : vector<8x16xbf16>, vector<16x16xbf16>, vector<8x16xf32> -> vector<8x16xf32>
    %4 = arith.subf %0, %3 : vector<8x16xf32>
    %5 = arith.mulf %4, %4 : vector<8x16xf32>
    %6 = arith.truncf %5 : vector<8x16xf32> to vector<8x16xbf16>
    %cst_3 = arith.constant dense<0.000000e+00> : vector<8x16xf32>
    %7 = tpu.matmul %6, %1, %cst_3 {dimension_numbers = #tpu.dot_dimension_numbers<[1], [0], [0], [1], [0, 0, 1, 1], [], []>} : vector<8x16xbf16>, vector<16x16xbf16>, vector<8x16xf32> -> vector<8x16xf32>
    %cst_4 = arith.constant 9.99999971E-10 : f32
    %8 = vector.broadcast %cst_4 : f32 to vector<8x16xf32>
    %9 = arith.addf %7, %8 : vector<8x16xf32>
    %10 = math.rsqrt %9 : vector<8x16xf32>
    %11 = arith.mulf %4, %10 : vector<8x16xf32>
    %c0_5 = arith.constant 0 : index
    %c0_6 = arith.constant 0 : index
    %12 = vector.load %arg7[%c0_5, %c0_6] : memref<1x16xf32, #tpu.memory_space<vmem>>, vector<1x16xf32>
    %13 = vector.broadcast %12 : vector<1x16xf32> to vector<8x16xf32>
    %14 = arith.mulf %11, %13 : vector<8x16xf32>
    %c0_7 = arith.constant 0 : index
    %c0_8 = arith.constant 0 : index
    %15 = vector.load %arg8[%c0_7, %c0_8] : memref<1x16xf32, #tpu.memory_space<vmem>>, vector<1x16xf32>
    %16 = vector.broadcast %15 : vector<1x16xf32> to vector<8x16xf32>
    %17 = arith.addf %14, %16 : vector<8x16xf32>
    %18 = arith.truncf %17 : vector<8x16xf32> to vector<8x16xbf16>
    %c0_9 = arith.constant 0 : index
    %c0_10 = arith.constant 0 : index
    %19 = vector.load %arg5[%c0_9, %c0_10] : memref<16x16xbf16, #tpu.memory_space<vmem>>, vector<16x16xbf16>
    %cst_11 = arith.constant dense<0.000000e+00> : vector<8x16xf32>
    %20 = tpu.matmul %18, %19, %cst_11 {dimension_numbers = #tpu.dot_dimension_numbers<[1], [0], [0], [1], [0, 0, 1, 1], [], []>} : vector<8x16xbf16>, vector<16x16xbf16>, vector<8x16xf32> -> vector<8x16xf32>
    %c0_12 = arith.constant 0 : index
    %c0_13 = arith.constant 0 : index
    %21 = vector.load %arg6[%c0_12, %c0_13] : memref<1x16xf32, #tpu.memory_space<vmem>>, vector<1x16xf32>
    %22 = vector.broadcast %21 : vector<1x16xf32> to vector<8x16xf32>
    %23 = arith.addf %20, %22 : vector<8x16xf32>
    %c0_14 = arith.constant 0 : index
    %c0_15 = arith.constant 0 : index
    %24 = vector.load %arg2[%c0_14, %c0_15] : memref<8x16xf32, #tpu.memory_space<vmem>>, vector<8x16xf32>
    %25 = arith.addf %23, %24 : vector<8x16xf32>
    %c0_16 = arith.constant 0 : index
    %c0_17 = arith.constant 0 : index
    %26 = vector.load %arg3[%c0_16, %c0_17] : memref<8x16xf32, #tpu.memory_space<vmem>>, vector<8x16xf32>
    %27 = arith.addf %25, %26 : vector<8x16xf32>
    %cst_18 = arith.constant 0.999994993 : f32
    %28 = vector.broadcast %cst_18 : f32 to vector<8x16xf32>
    %29 = arith.mulf %27, %28 : vector<8x16xf32>
    %cst_19 = arith.constant 0.000000e+00 : f32
    %30 = vector.broadcast %cst_19 : f32 to vector<8x16xf32>
    %31 = arith.maximumf %29, %30 : vector<8x16xf32>
    %c0_20 = arith.constant 0 : index
    %c0_21 = arith.constant 0 : index
    %32 = vector.load %arg9[%c0_20, %c0_21] : memref<8x16xf32, #tpu.memory_space<vmem>>, vector<8x16xf32>
    tpu.vector_store %arg9[%c0_20, %c0_21], %27 {strides = array<i32>} : memref<8x16xf32, #tpu.memory_space<vmem>>, vector<8x16xf32>,
    %c0_22 = arith.constant 0 : index
    %c0_23 = arith.constant 0 : index
    %33 = vector.load %arg10[%c0_22, %c0_23] : memref<8x16xf32, #tpu.memory_space<vmem>>, vector<8x16xf32>
    tpu.vector_store %arg10[%c0_22, %c0_23], %31 {strides = array<i32>} : memref<8x16xf32, #tpu.memory_space<vmem>>, vector<8x16xf32>,
    return
  }
  func.func @transform_0(%arg0: i32) -> (i32, i32) {
    %c0_i32 = arith.constant 0 : i32
    %c0_i32_0 = arith.constant 0 : i32
    return %arg0, %c0_i32 : i32, i32
  }
  func.func @transform_1(%arg0: i32) -> (i32, i32) {
    %c0_i32 = arith.constant 0 : i32
    %c0_i32_0 = arith.constant 0 : i32
    return %arg0, %c0_i32 : i32, i32
  }
  func.func @transform_2(%arg0: i32) -> (i32, i32) {
    %c0_i32 = arith.constant 0 : i32
    %c0_i32_0 = arith.constant 0 : i32
    return %arg0, %c0_i32 : i32, i32
  }
  func.func @transform_3(%arg0: i32) -> (i32, i32) {
    %c0_i32 = arith.constant 0 : i32
    %c0_i32_0 = arith.constant 0 : i32
    %c0_i32_1 = arith.constant 0 : i32
    return %c0_i32, %c0_i32_0 : i32, i32
  }
  func.func @transform_4(%arg0: i32) -> (i32, i32) {
    %c0_i32 = arith.constant 0 : i32
    %c0_i32_0 = arith.constant 0 : i32
    %c0_i32_1 = arith.constant 0 : i32
    return %c0_i32, %c0_i32_0 : i32, i32
  }
  func.func @transform_5(%arg0: i32) -> (i32, i32) {
    %c0_i32 = arith.constant 0 : i32
    %c0_i32_0 = arith.constant 0 : i32
    %c0_i32_1 = arith.constant 0 : i32
    return %c0_i32, %c0_i32_0 : i32, i32
  }
  func.func @transform_6(%arg0: i32) -> (i32, i32) {
    %c0_i32 = arith.constant 0 : i32
    %c0_i32_0 = arith.constant 0 : i32
    %c0_i32_1 = arith.constant 0 : i32
    return %c0_i32, %c0_i32_0 : i32, i32
  }
  func.func @transform_7(%arg0: i32) -> (i32, i32) {
    %c0_i32 = arith.constant 0 : i32
    %c0_i32_0 = arith.constant 0 : i32
    %c0_i32_1 = arith.constant 0 : i32
    return %c0_i32, %c0_i32_0 : i32, i32
  }
  func.func @transform_8(%arg0: i32) -> (i32, i32) {
    %c0_i32 = arith.constant 0 : i32
    %c0_i32_0 = arith.constant 0 : i32
    return %arg0, %c0_i32 : i32, i32
  }
  func.func @transform_9(%arg0: i32) -> (i32, i32) {
    %c0_i32 = arith.constant 0 : i32
    %c0_i32_0 = arith.constant 0 : i32
    return %arg0, %c0_i32 : i32, i32
  }
}

module attributes {stable_mosaic.version = 11 : i64} {
  func.func @_linear_kernel(%arg0: i32, %arg1: memref<8x16xf32, #tpu.memory_space<vmem>>, %arg2: memref<16x128xbf16, #tpu.memory_space<vmem>>, %arg3: memref<1x128xf32, #tpu.memory_space<vmem>>, %arg4: memref<8x128xf32, #tpu.memory_space<vmem>>) attributes {dimension_semantics = [#tpu.dimension_semantics<parallel>], iteration_bounds = array<i64: 1>, scalar_prefetch = 0 : i64, scratch_operands = 0 : i64, tpu.core_type = #tpu.core_type<tc>, window_params = [{transform_indices = @transform_0, window_bounds = array<i64: 8, 16>}, {pipeline_mode = #tpu.pipeline_mode<synchronous>, transform_indices = @transform_1, window_bounds = array<i64: 16, 128>}, {pipeline_mode = #tpu.pipeline_mode<synchronous>, transform_indices = @transform_2, window_bounds = array<i64: 1, 128>}, {transform_indices = @transform_3, window_bounds = array<i64: 8, 128>}]} {
    %c0 = arith.constant 0 : index
    %c0_0 = arith.constant 0 : index
    %0 = vector.load %arg1[%c0, %c0_0] : memref<8x16xf32, #tpu.memory_space<vmem>>, vector<8x16xf32>
    %1 = arith.truncf %0 : vector<8x16xf32> to vector<8x16xbf16>
    %c0_1 = arith.constant 0 : index
    %c0_2 = arith.constant 0 : index
    %2 = vector.load %arg2[%c0_1, %c0_2] : memref<16x128xbf16, #tpu.memory_space<vmem>>, vector<16x128xbf16>
    %cst = arith.constant dense<0.000000e+00> : vector<8x128xf32>
    %3 = tpu.matmul %1, %2, %cst {dimension_numbers = #tpu.dot_dimension_numbers<[1], [0], [0], [1], [0, 0, 1, 1], [], []>} : vector<8x16xbf16>, vector<16x128xbf16>, vector<8x128xf32> -> vector<8x128xf32>
    %c0_3 = arith.constant 0 : index
    %c0_4 = arith.constant 0 : index
    %4 = vector.load %arg3[%c0_3, %c0_4] : memref<1x128xf32, #tpu.memory_space<vmem>>, vector<1x128xf32>
    %5 = vector.broadcast %4 : vector<1x128xf32> to vector<8x128xf32>
    %6 = arith.addf %3, %5 : vector<8x128xf32>
    %c0_5 = arith.constant 0 : index
    %c0_6 = arith.constant 0 : index
    %7 = vector.load %arg4[%c0_5, %c0_6] : memref<8x128xf32, #tpu.memory_space<vmem>>, vector<8x128xf32>
    tpu.vector_store %arg4[%c0_5, %c0_6], %6 {strides = array<i32>} : memref<8x128xf32, #tpu.memory_space<vmem>>, vector<8x128xf32>,
    return
  }
  func.func @transform_0(%arg0: i32) -> (i32, i32) {
    %c0_i32 = arith.constant 0 : i32
    %c0_i32_0 = arith.constant 0 : i32
    return %arg0, %c0_i32 : i32, i32
  }
  func.func @transform_1(%arg0: i32) -> (i32, i32) {
    %c0_i32 = arith.constant 0 : i32
    %c0_i32_0 = arith.constant 0 : i32
    %c0_i32_1 = arith.constant 0 : i32
    return %c0_i32, %c0_i32_0 : i32, i32
  }
  func.func @transform_2(%arg0: i32) -> (i32, i32) {
    %c0_i32 = arith.constant 0 : i32
    %c0_i32_0 = arith.constant 0 : i32
    %c0_i32_1 = arith.constant 0 : i32
    return %c0_i32, %c0_i32_0 : i32, i32
  }
  func.func @transform_3(%arg0: i32) -> (i32, i32) {
    %c0_i32 = arith.constant 0 : i32
    %c0_i32_0 = arith.constant 0 : i32
    return %arg0, %c0_i32 : i32, i32
  }
}

module attributes {stable_mosaic.version = 11 : i64} {
  func.func @_epilogue_kernel(%arg0: i32, %arg1: memref<8x16xf32, #tpu.memory_space<vmem>>, %arg2: memref<8x16xf32, #tpu.memory_space<vmem>>, %arg3: memref<8x16xf32, #tpu.memory_space<vmem>>, %arg4: memref<16x16xbf16, #tpu.memory_space<vmem>>, %arg5: memref<16x16xbf16, #tpu.memory_space<vmem>>, %arg6: memref<1x16xf32, #tpu.memory_space<vmem>>, %arg7: memref<1x16xf32, #tpu.memory_space<vmem>>, %arg8: memref<1x16xf32, #tpu.memory_space<vmem>>, %arg9: memref<16x5xbf16, #tpu.memory_space<vmem>>, %arg10: memref<1x5xf32, #tpu.memory_space<vmem>>, %arg11: memref<8x5xf32, #tpu.memory_space<vmem>>) attributes {dimension_semantics = [#tpu.dimension_semantics<parallel>], iteration_bounds = array<i64: 1>, scalar_prefetch = 0 : i64, scratch_operands = 0 : i64, tpu.core_type = #tpu.core_type<tc>, window_params = [{transform_indices = @transform_0, window_bounds = array<i64: 8, 16>}, {transform_indices = @transform_1, window_bounds = array<i64: 8, 16>}, {transform_indices = @transform_2, window_bounds = array<i64: 8, 16>}, {pipeline_mode = #tpu.pipeline_mode<synchronous>, transform_indices = @transform_3, window_bounds = array<i64: 16, 16>}, {pipeline_mode = #tpu.pipeline_mode<synchronous>, transform_indices = @transform_4, window_bounds = array<i64: 16, 16>}, {pipeline_mode = #tpu.pipeline_mode<synchronous>, transform_indices = @transform_5, window_bounds = array<i64: 1, 16>}, {pipeline_mode = #tpu.pipeline_mode<synchronous>, transform_indices = @transform_6, window_bounds = array<i64: 1, 16>}, {pipeline_mode = #tpu.pipeline_mode<synchronous>, transform_indices = @transform_7, window_bounds = array<i64: 1, 16>}, {pipeline_mode = #tpu.pipeline_mode<synchronous>, transform_indices = @transform_8, window_bounds = array<i64: 16, 5>}, {pipeline_mode = #tpu.pipeline_mode<synchronous>, transform_indices = @transform_9, window_bounds = array<i64: 1, 5>}, {transform_indices = @transform_10, window_bounds = array<i64: 8, 5>}]} {
    %c0 = arith.constant 0 : index
    %c0_0 = arith.constant 0 : index
    %0 = vector.load %arg1[%c0, %c0_0] : memref<8x16xf32, #tpu.memory_space<vmem>>, vector<8x16xf32>
    %c0_1 = arith.constant 0 : index
    %c0_2 = arith.constant 0 : index
    %1 = vector.load %arg4[%c0_1, %c0_2] : memref<16x16xbf16, #tpu.memory_space<vmem>>, vector<16x16xbf16>
    %2 = arith.truncf %0 : vector<8x16xf32> to vector<8x16xbf16>
    %cst = arith.constant dense<0.000000e+00> : vector<8x16xf32>
    %3 = tpu.matmul %2, %1, %cst {dimension_numbers = #tpu.dot_dimension_numbers<[1], [0], [0], [1], [0, 0, 1, 1], [], []>} : vector<8x16xbf16>, vector<16x16xbf16>, vector<8x16xf32> -> vector<8x16xf32>
    %4 = arith.subf %0, %3 : vector<8x16xf32>
    %5 = arith.mulf %4, %4 : vector<8x16xf32>
    %6 = arith.truncf %5 : vector<8x16xf32> to vector<8x16xbf16>
    %cst_3 = arith.constant dense<0.000000e+00> : vector<8x16xf32>
    %7 = tpu.matmul %6, %1, %cst_3 {dimension_numbers = #tpu.dot_dimension_numbers<[1], [0], [0], [1], [0, 0, 1, 1], [], []>} : vector<8x16xbf16>, vector<16x16xbf16>, vector<8x16xf32> -> vector<8x16xf32>
    %cst_4 = arith.constant 9.99999971E-10 : f32
    %8 = vector.broadcast %cst_4 : f32 to vector<8x16xf32>
    %9 = arith.addf %7, %8 : vector<8x16xf32>
    %10 = math.rsqrt %9 : vector<8x16xf32>
    %11 = arith.mulf %4, %10 : vector<8x16xf32>
    %c0_5 = arith.constant 0 : index
    %c0_6 = arith.constant 0 : index
    %12 = vector.load %arg7[%c0_5, %c0_6] : memref<1x16xf32, #tpu.memory_space<vmem>>, vector<1x16xf32>
    %13 = vector.broadcast %12 : vector<1x16xf32> to vector<8x16xf32>
    %14 = arith.mulf %11, %13 : vector<8x16xf32>
    %c0_7 = arith.constant 0 : index
    %c0_8 = arith.constant 0 : index
    %15 = vector.load %arg8[%c0_7, %c0_8] : memref<1x16xf32, #tpu.memory_space<vmem>>, vector<1x16xf32>
    %16 = vector.broadcast %15 : vector<1x16xf32> to vector<8x16xf32>
    %17 = arith.addf %14, %16 : vector<8x16xf32>
    %18 = arith.truncf %17 : vector<8x16xf32> to vector<8x16xbf16>
    %c0_9 = arith.constant 0 : index
    %c0_10 = arith.constant 0 : index
    %19 = vector.load %arg5[%c0_9, %c0_10] : memref<16x16xbf16, #tpu.memory_space<vmem>>, vector<16x16xbf16>
    %cst_11 = arith.constant dense<0.000000e+00> : vector<8x16xf32>
    %20 = tpu.matmul %18, %19, %cst_11 {dimension_numbers = #tpu.dot_dimension_numbers<[1], [0], [0], [1], [0, 0, 1, 1], [], []>} : vector<8x16xbf16>, vector<16x16xbf16>, vector<8x16xf32> -> vector<8x16xf32>
    %c0_12 = arith.constant 0 : index
    %c0_13 = arith.constant 0 : index
    %21 = vector.load %arg6[%c0_12, %c0_13] : memref<1x16xf32, #tpu.memory_space<vmem>>, vector<1x16xf32>
    %22 = vector.broadcast %21 : vector<1x16xf32> to vector<8x16xf32>
    %23 = arith.addf %20, %22 : vector<8x16xf32>
    %c0_14 = arith.constant 0 : index
    %c0_15 = arith.constant 0 : index
    %24 = vector.load %arg2[%c0_14, %c0_15] : memref<8x16xf32, #tpu.memory_space<vmem>>, vector<8x16xf32>
    %25 = arith.addf %23, %24 : vector<8x16xf32>
    %c0_16 = arith.constant 0 : index
    %c0_17 = arith.constant 0 : index
    %26 = vector.load %arg3[%c0_16, %c0_17] : memref<8x16xf32, #tpu.memory_space<vmem>>, vector<8x16xf32>
    %27 = arith.addf %25, %26 : vector<8x16xf32>
    %cst_18 = arith.constant 0.999994993 : f32
    %28 = vector.broadcast %cst_18 : f32 to vector<8x16xf32>
    %29 = arith.mulf %27, %28 : vector<8x16xf32>
    %cst_19 = arith.constant 0.000000e+00 : f32
    %30 = vector.broadcast %cst_19 : f32 to vector<8x16xf32>
    %31 = arith.maximumf %29, %30 : vector<8x16xf32>
    %32 = arith.truncf %31 : vector<8x16xf32> to vector<8x16xbf16>
    %c0_20 = arith.constant 0 : index
    %c0_21 = arith.constant 0 : index
    %33 = vector.load %arg9[%c0_20, %c0_21] : memref<16x5xbf16, #tpu.memory_space<vmem>>, vector<16x5xbf16>
    %cst_22 = arith.constant dense<0.000000e+00> : vector<8x5xf32>
    %34 = tpu.matmul %32, %33, %cst_22 {dimension_numbers = #tpu.dot_dimension_numbers<[1], [0], [0], [1], [0, 0, 1, 1], [], []>} : vector<8x16xbf16>, vector<16x5xbf16>, vector<8x5xf32> -> vector<8x5xf32>
    %c0_23 = arith.constant 0 : index
    %c0_24 = arith.constant 0 : index
    %35 = vector.load %arg10[%c0_23, %c0_24] : memref<1x5xf32, #tpu.memory_space<vmem>>, vector<1x5xf32>
    %36 = vector.broadcast %35 : vector<1x5xf32> to vector<8x5xf32>
    %37 = arith.addf %34, %36 : vector<8x5xf32>
    %c0_25 = arith.constant 0 : index
    %c0_26 = arith.constant 0 : index
    %38 = vector.load %arg11[%c0_25, %c0_26] : memref<8x5xf32, #tpu.memory_space<vmem>>, vector<8x5xf32>
    tpu.vector_store %arg11[%c0_25, %c0_26], %37 {strides = array<i32>} : memref<8x5xf32, #tpu.memory_space<vmem>>, vector<8x5xf32>,
    return
  }
  func.func @transform_0(%arg0: i32) -> (i32, i32) {
    %c0_i32 = arith.constant 0 : i32
    %c0_i32_0 = arith.constant 0 : i32
    return %arg0, %c0_i32 : i32, i32
  }
  func.func @transform_1(%arg0: i32) -> (i32, i32) {
    %c0_i32 = arith.constant 0 : i32
    %c0_i32_0 = arith.constant 0 : i32
    return %arg0, %c0_i32 : i32, i32
  }
  func.func @transform_2(%arg0: i32) -> (i32, i32) {
    %c0_i32 = arith.constant 0 : i32
    %c0_i32_0 = arith.constant 0 : i32
    return %arg0, %c0_i32 : i32, i32
  }
  func.func @transform_3(%arg0: i32) -> (i32, i32) {
    %c0_i32 = arith.constant 0 : i32
    %c0_i32_0 = arith.constant 0 : i32
    %c0_i32_1 = arith.constant 0 : i32
    return %c0_i32, %c0_i32_0 : i32, i32
  }
  func.func @transform_4(%arg0: i32) -> (i32, i32) {
    %c0_i32 = arith.constant 0 : i32
    %c0_i32_0 = arith.constant 0 : i32
    %c0_i32_1 = arith.constant 0 : i32
    return %c0_i32, %c0_i32_0 : i32, i32
  }
  func.func @transform_5(%arg0: i32) -> (i32, i32) {
    %c0_i32 = arith.constant 0 : i32
    %c0_i32_0 = arith.constant 0 : i32
    %c0_i32_1 = arith.constant 0 : i32
    return %c0_i32, %c0_i32_0 : i32, i32
  }
  func.func @transform_6(%arg0: i32) -> (i32, i32) {
    %c0_i32 = arith.constant 0 : i32
    %c0_i32_0 = arith.constant 0 : i32
    %c0_i32_1 = arith.constant 0 : i32
    return %c0_i32, %c0_i32_0 : i32, i32
  }
  func.func @transform_7(%arg0: i32) -> (i32, i32) {
    %c0_i32 = arith.constant 0 : i32
    %c0_i32_0 = arith.constant 0 : i32
    %c0_i32_1 = arith.constant 0 : i32
    return %c0_i32, %c0_i32_0 : i32, i32
  }
  func.func @transform_8(%arg0: i32) -> (i32, i32) {
    %c0_i32 = arith.constant 0 : i32
    %c0_i32_0 = arith.constant 0 : i32
    %c0_i32_1 = arith.constant 0 : i32
    return %c0_i32, %c0_i32_0 : i32, i32
  }
  func.func @transform_9(%arg0: i32) -> (i32, i32) {
    %c0_i32 = arith.constant 0 : i32
    %c0_i32_0 = arith.constant 0 : i32
    %c0_i32_1 = arith.constant 0 : i32
    return %c0_i32, %c0_i32_0 : i32, i32
  }
  func.func @transform_10(%arg0: i32) -> (i32, i32) {
    %c0_i32 = arith.constant 0 : i32
    %c0_i32_0 = arith.constant 0 : i32
    return %arg0, %c0_i32 : i32, i32
  }
}

</mosaic_0001>

<bundles_post_ra>
// kernel: gipa_wide_forward.8
= control target key start
LH: loop header
LB: loop body
LE: loop exit
PB: predicated region body
PF: predicated region fallthrough
CT: control target
= control target key end

     0   :  { %vm41_vm0 = vcmask 1045504   ;;  %v177_v0 = vmov 0.0   ;;  %vm178_vm1 = vmmov 0   ;;  %vm37_vm2 = vcmask 97280   ;;  %s227_s1 = inlined_call_operand.vmem [shape: bf16[12,16], index: 1, kind: input, shape index: {}]   ;;  %s228_s0 = inlined_call_operand.vmem [shape: f32[8,12], index: 0, kind: input, shape index: {}]   ;;  %s229_s3 = inlined_call_operand.vmem [shape: bf16[16,128], index: 3, kind: input, shape index: {}]   ;;  %s230_s2 = inlined_call_operand.vmem [shape: f32[1,16], index: 2, kind: input, shape index: {}]   ;;  %s231_s4 = inlined_call_operand.vmem [shape: f32[1,128], index: 4, kind: input, shape index: {}]   ;;  %s232_s5 = inlined_call_operand.vmem [shape: f32[8,128], index: 5, kind: output, shape index: {}]  }
   0x1   :  { %161 = vmatprep.subr.bf16.mxu0 %v177_v0  ;;  %v175_v1 = vld [vmem:[%s227_s1] sm:$0x3f]   ;;  %163 = vmatprep.mubr.msk.bf16.mxu0 %vm178_vm1, %v177_v0  ;;  %vm102_vm3 = vcmask 130048  }
   0x2   :  { %v21_v2 = vld [vmem:[%s228_s0] sm:$0xff]  ;;  %167 = vmatprep.subr.bf16.mxu1 %v177_v0  ;;  %169 = vmatprep.mubr.msk.bf16.mxu1 %vm178_vm1, %v177_v0  ;;  %v43_v3 = vsel %vm41_vm0, %v175_v1, 0 }
   0x3   :  { %v22_v4 = vpack.c.bf16 %v21_v2, %v21_v2  ;;  %162 = vmatpush3.bf16.msra.mxu0 %v43_v3  ;;  %v176_v5 = vld [vmem:[%s229_s3] sm:$0xff]  }
   0x4   :  { %168 = vmatpush3.bf16.msra.mxu1 %v176_v5  ;;  %v151_v6 = vld [vmem:[%s230_s2] ss:$0 sm:$0xff] }
   0x5   :  { %v154_v14 = vld [vmem:[%s231_s4] ss:$0 sm:$0xff] }
   0x6   :  { %164 = vmatmul.mubr.msk.bf16.vlgmr.msra.gmra.mrb[0].mxu0 %vm37_vm2, %v22_v4 }
  0xd9   :  { %v79_v7 = vpop.f32.mrb[0].mxu0 }
  0xda   :  { %v80_v8 = vadd.f32 %v151_v6, %v79_v7  ;;  %v165_v9 = vpop.f32.mrb[1].mxu0 }
  0xdb   :  { %v82_v10 = vpop.f32.mrb[2].mxu0 }
  0xdc   :  { %v85_v11 = vmax.f32 %v80_v8, 0.0  ;;  %v166_v12 = vpop.f32.mrb[3].mxu0 }
  0xde   :  { %v86_v13 = vpack.c.bf16 %v85_v11, %v85_v11 }
  0xe0   :  { %170 = vmatmul.mubr.msk.bf16.vlgmr.msra.gmra.mrb[0].mxu1 %vm102_vm3, %v86_v13 }
 0x1b3   :  { %v140_v15 = vpop.f32.mrb[0].mxu1 }
 0x1b4   :  { %v141_v16 = vadd.f32 %v154_v14, %v140_v15  ;;  %v171_v17 = vpop.f32.mrb[1].mxu1 }
 0x1b5   :  { %v143_v18 = vpop.f32.mrb[2].mxu1 }
 0x1b6   :  { %146 = vst [vmem:[%s232_s5] sm:$0xff] %v141_v16  ;;  %v172_v19 = vpop.f32.mrb[3].mxu1 }

// kernel: gipa_wide_forward.10
= control target key start
LH: loop header
LB: loop body
LE: loop exit
PB: predicated region body
PF: predicated region fallthrough
CT: control target
= control target key end

     0   :  { %s649_s0 = inlined_call_operand.vmem [shape: s32[2], index: 0, kind: input, shape index: {}]   ;;  %s650_s4 = inlined_call_operand.vmem [shape: s32[8,16], index: 4, kind: input, shape index: {}]   ;;  %s651_s5 = inlined_call_operand.vmem [shape: bf16[16,128], index: 5, kind: input, shape index: {}]   ;;  %s652_s6 = inlined_call_operand.vmem [shape: bf16[2,16], index: 6, kind: input, shape index: {}]   ;;  %s653_s7 = inlined_call_operand.vmem [shape: f32[8,16], index: 7, kind: output, shape index: {}]   ;;  %s654_s1 = inlined_call_operand.vmem [shape: s32[2], index: 1, kind: input, shape index: {}]   ;;  %s655_s2 = inlined_call_operand.vmem [shape: s32[2], index: 2, kind: input, shape index: {}]   ;;  %s656_s3 = inlined_call_operand.vmem [shape: s32[2], index: 3, kind: input, shape index: {}]  }
   0x1   :  { %s12_s26 = sshll.u32 %s649_s0, 4  ;;  %s16_s29 = sshll.u32 %s654_s1, 4  ;;  %s13_s26 = int_to_ptr.vmem [resolvable:$true] %s12_s26  ;;  %s17_s29 = int_to_ptr.vmem [resolvable:$true] %s16_s29 }
   0x2   :  { %s492_s30 = scalar_lea.vmem %s13_s26, 16  ;;  %p497_p1 = scmp.lt.s32.totalorder %s13_s26, %s13_s26 }
   0x3   :  { %p493_p0 = scmp.ne.s32.totalorder %s13_s26, %s492_s30  ;;  %p498_p2 = scmp.lt.s32.totalorder %s492_s30, %s492_s30 }
   0x5   :  { %p499_p3 = por %p498_p2, %p497_p1 }
   0x7   :  { %p500_p4 = pnand %p499_p3, %p493_p0 }
   0x9   :  { %503 = shalt.err (!%p500_p4)  }
   0xa   :  { %s550_s8 = smov [#allocation3]   ;;  %s504_s9 = scalar_lea.vmem %s17_s29, 16 }
   0xb   :  { %15 = dma.vmem_to_smem %s13_s26, 16, %s550_s8, [#allocation2] }
   0xc   :  { %p505_p5 = scmp.ne.s32.totalorder %s17_s29, %s504_s9  ;;  %p509_p6 = scmp.lt.s32.totalorder %s17_s29, %s17_s29 }
   0xd   :  { %p510_p7 = scmp.lt.s32.totalorder %s504_s9, %s504_s9 }
   0xf   :  { %p511_p8 = por %p510_p7, %p509_p6 }
  0x11   :  { %p512_p9 = pnand %p511_p8, %p505_p5 }
  0x13   :  { %515 = shalt.err (!%p512_p9)  }
  0x14   :  { %s551_s0 = smov [#allocation4]   ;;  %s20_s11 = sshll.u32 %s655_s2, 4  ;;  %s21_s11 = int_to_ptr.vmem [resolvable:$true] %s20_s11 }
  0x15   :  { %19 = dma.vmem_to_smem %s17_s29, 16, %s551_s0, [#allocation2] }
  0x16   :  { %s24_s14 = sshll.u32 %s656_s3, 4  ;;  %s516_s15 = scalar_lea.vmem %s21_s11, 16  ;;  %s25_s14 = int_to_ptr.vmem [resolvable:$true] %s24_s14 }
  0x17   :  { %p517_p10 = scmp.ne.s32.totalorder %s21_s11, %s516_s15  ;;  %p521_p11 = scmp.lt.s32.totalorder %s21_s11, %s21_s11 }
  0x18   :  { %p522_p12 = scmp.lt.s32.totalorder %s516_s15, %s516_s15 }
  0x1a   :  { %p523_p13 = por %p522_p12, %p521_p11 }
  0x1c   :  { %p524_p0 = pnand %p523_p13, %p517_p10 }
  0x1e   :  { %527 = shalt.err (!%p524_p0)  }
  0x1f   :  { %s552_s16 = smov [#allocation5]   ;;  %s528_s17 = scalar_lea.vmem %s25_s14, 16 }
  0x20   :  { %23 = dma.vmem_to_smem %s21_s11, 16, %s552_s16, [#allocation2] }
  0x21   :  { %p529_p1 = scmp.ne.s32.totalorder %s25_s14, %s528_s17  ;;  %p533_p2 = scmp.lt.s32.totalorder %s25_s14, %s25_s14 }
  0x22   :  { %p534_p3 = scmp.lt.s32.totalorder %s528_s17, %s528_s17 }
  0x24   :  { %p535_p4 = por %p534_p3, %p533_p2 }
  0x26   :  { %p536_p5 = pnand %p535_p4, %p529_p1 }
  0x28   :  { %539 = shalt.err (!%p536_p5)  }
  0x29   :  { %s553_s2 = smov [#allocation6]  }
  0x2a   :  { %27 = dma.vmem_to_smem %s25_s14, 16, %s553_s2, [#allocation2] }
  0x2b   :  { %544 = dma.done.wait [#allocation2], 64 }
  0x2c   :  { %545 = vsyncadd [#allocation2], 4294967232 }
  0x2d   :  { %29 = sfence }
  0x2e   :  { %s610_s3 = smov 0  }
  0x2f LB: > { %s616_s18 = sadd.s32 4294967295, %s548_s3   ;;  %p443_p6 = scmp.ge.s32.totalorder %s548_s3, 1  ;;  %s548_s3 = sphi %s610_s3, %s35_s3  }
  0x30   : > { %p179_p7 = scmp.lt.s32.totalorder %s548_s3, 3 }
  0x32   : > { %p180_p8 = pnand %p443_p6, %p179_p7 }
  0x33   : > { %s209_s19 = sld [smem:[#allocation4 + %s616_s18]] (!%p180_p8) }
  0x34   : > { %183 = sbr.rel (%p180_p8) target bundleno = 637 (0x27d), region = 32  ;;  %s215_s20 = sld [smem:[#allocation4 + %s616_s18]] (!%p180_p8) }
  0x35   : > { %s223_s21 = sld [smem:[#allocation3 + %s616_s18]] (!%p180_p8) }
  0x36   : > { %s230_s22 = sld [smem:[#allocation5 + %s616_s18]] (!%p180_p8) }
  0x39   : > { %p210_p9 = scmp.lt.s32.totalorder (!%p180_p8), %s209_s19, 0 }
  0x3a   : > { %s445_s23 = sshll.u32 (!%p180_p8), %s215_s20, 1 }
  0x3b   : > { %p217_p10 = scmp.lt.s32.totalorder %s445_s23, 1  ;;  %p224_p11 = scmp.lt.s32.totalorder %s223_s21, 0 }
  0x3c   : > { %s658_s19 = smov (!%p210_p9, %s209_s19), 0  ;;  %p448_p12 = scmp.ne.s32.totalorder %s230_s22, 1 }
  0x3d   : > { %s660_s23 = smov (!%p217_p10, %s445_s23), 1  ;;  %s444_s24 = sshll.u32 %s658_s19, 3  ;;  %vm235_vm0 = vcmask (!%p448_p12), 130048   ;;  %v554_v0 = vmov (!%p448_p12), 0.0  }
  0x3e   : > { %s627_s27 = scalar_lea.vmem %s650_s4, %s444_s24  ;;  %s446_s28 = sshll.u32 %s660_s23, 2 }
  0x3f   : > { %s220_s8 = scalar_lea.vmem %s651_s5, %s446_s28  ;;  %s662_s21 = smov (!%p224_p11, %s223_s21), 0 }
  0x40   : > { %s447_s9 = sshll.u32 %s662_s21, 3  ;;  %234 = sbr.rel (%p448_p12) target bundleno = 71 (0x47), region = 36 }
  0x41   : > { %s635_s10 = scalar_lea.vmem %s653_s7, %s447_s9 }
  0x42   : > { %236 = vst.msk [vmem:[%s635_s10] sm:$0xff] (!%p448_p12), %vm235_vm0, %v554_v0 }
  0x47 PF: > { %s237_s11 = sld [smem:[#allocation6 + %s616_s18]] }
  0x4d   : > { %p449_p13 = scmp.ne.s32.totalorder %s237_s11, 1 }
  0x4e   : > { %v457_v1 = vld [vmem:[%s220_s8] sm:$0xff] (!%p449_p13)   ;;  %vm276_vm1 = vcmask (!%p449_p13), 1040384   ;;  %v555_v5 = vmov (!%p449_p13), 0.0   ;;  %vm556_vm2 = vmmov (!%p449_p13), 0   ;;  %s557_s14 = smov (!%p449_p13), 112   ;;  %vm272_vm5 = vcmask (!%p449_p13), 15360  }
  0x4f   : > { %241 = sbr.rel (%p449_p13) target bundleno = 637 (0x27d), region = 40  ;;  %v268_v2 = vld [vmem:[%s652_s6] sm:$0x1] (!%p449_p13)  ;;  %v458_v3 = vunpack.c.l.bf16 (!%p449_p13), %v457_v1  ;;  %v459_v4 = vunpack.c.h.bf16 (!%p449_p13), %v457_v1  ;;  %464 = vmatprep.subr.bf16.mxu0 (!%p449_p13), %v555_v5  ;;  %470 = vmatprep.subr.bf16.mxu1 (!%p449_p13), %v555_v5  ;;  %s242_s15 = sld [smem:[#allocation3 + %s616_s18]] (!%p449_p13)  ;;  %v247_v13 = vlaneseq (!%p449_p13)  ;;  %vm325_vm7 = vcmask (!%p449_p13), 130048  }
  0x50   : > { %v278_v6 = vsel (!%p449_p13), %vm276_vm1, %v268_v2, 0  ;;  %466 = vmatprep.mubr.msk.bf16.mxu0 (!%p449_p13), %vm556_vm2, %v555_v5  ;;  %472 = vmatprep.mubr.msk.bf16.mxu1 (!%p449_p13), %vm556_vm2, %v555_v5  ;;  %v244_v15 = vld [vmem:[%s627_s27] sm:$0x1] (!%p449_p13) }
  0x51   : > { %465 = vmatpush3.bf16.msra.mxu0 (!%p449_p13), %v278_v6  ;;  %vm261_vm3 = vcmp.ge.f32.partialorder (!%p449_p13), %v458_v3, 0.0  ;;  %vm262_vm4 = vcmp.ge.f32.partialorder (!%p449_p13), %v459_v4, 0.0  ;;  %v263_v7 = vmul.f32 (!%p449_p13), 0.2, %v458_v3  ;;  %v264_v8 = vmul.f32 (!%p449_p13), 0.2, %v459_v4 }
  0x52   : > { %v248_v14 = vshrl.u32 (!%p449_p13), %v247_v13, 7  ;;  %v324_v29 = vld [vmem:[%s635_s10] sm:$0xff] (!%p449_p13) }
  0x53   : > { %v265_v9 = vsel (!%p449_p13), %vm261_vm3, %v458_v3, %v263_v7  ;;  %v266_v10 = vsel (!%p449_p13), %vm262_vm4, %v459_v4, %v264_v8 }
  0x54   : > { %v267_v11 = vpack.c.bf16 (!%p449_p13), %v266_v10, %v265_v9  ;;  %v251_v18 = vsub.s32 (!%p449_p13), 0, %v248_v14 }
  0x55   : > { %s450_s16 = sshll.u32 (!%p449_p13), %s242_s15, 3 }
  0x56   : > { %270 = vrot.lane.b32.xlu0 %v267_v11, %s557_s14  ;;  %v245_v16 = vstv %s450_s16 }
  0x57   : > { %v246_v17 = vsub.s32 %v244_v15, %v245_v16 }
  0x59   : > { %v252_v19 = vrot.slane %v246_v17, %v251_v18 }
  0x5b   : > { %vm253_vm6 = vcmp.eq.s32.totalorder %v248_v14, %v252_v19 }
  0x5c   : > { %v451_v26 = vsel %vm253_vm6, 1.0, %v555_v5 }
  0x5d   : > { %v256_v28 = vpack.c.bf16 %v451_v26, %v451_v26 }
  0xc8   : > { %v271_v12 = vpop.permute.xlu0 %270 }
  0xc9   : > { %467 = vmatmul.mubr.msk.bf16.vlgmr.msra.gmra.mrb[0].mxu0 %vm272_vm5, %v271_v12 }
 0x19c   : > { %v314_v20 = vpop.f32.mrb[0].mxu0 }
 0x19d   : > { %v468_v21 = vpop.f32.mrb[1].mxu0  ;;  %v321_v23 = vmul.f32 %v458_v3, %v314_v20 }
 0x19e   : > { %v317_v22 = vpop.f32.mrb[2].mxu0 }
 0x19f   : > { %v322_v24 = vmul.f32 %v459_v4, %v317_v22  ;;  %v469_v25 = vpop.f32.mrb[3].mxu0 }
 0x1a1   : > { %v323_v27 = vpack.c.bf16 %v322_v24, %v321_v23 }
 0x1a3   : > { %471 = vmatpush3.bf16.msra.mxu1 %v323_v27 }
 0x1a6   : > { %473 = vmatmul.mubr.msk.bf16.vlgmr.msra.gmra.mrb[0].mxu1 %vm325_vm7, %v256_v28 }
 0x279   : > { %v363_v30 = vpop.f32.mrb[0].mxu1 }
 0x27a   : > { %v369_v31 = vadd.f32 %v363_v30, %v324_v29  ;;  %v474_v32 = vpop.f32.mrb[1].mxu1 }
 0x27b   : > { %v366_v33 = vpop.f32.mrb[2].mxu1 }
 0x27c   : > { %370 = vst.msk [vmem:[%s635_s10] sm:$0xff] %vm325_vm7, %v369_v31  ;;  %v475_v34 = vpop.f32.mrb[3].mxu1 }
 0x27d PF: > { %s35_s3 = sadd.s32 1, %s548_s3  }
 0x27e   : > { %p32_p0 = scmp.ge.s32.totalorder %s35_s3, 4  }
 0x280   :  { %34 = sbr.rel (!%p32_p0) target bundleno = 47 (0x2f), region = 73 }

// kernel: gipa_wide_forward.9
= control target key start
LH: loop header
LB: loop body
LE: loop exit
PB: predicated region body
PF: predicated region fallthrough
CT: control target
= control target key end

     0   :  { %vm36_vm0 = vcmask 1042432   ;;  %v200_v0 = vmov 0.0   ;;  %vm201_vm1 = vmmov 0   ;;  %vm32_vm2 = vcmask 48128   ;;  %s260_s2 = inlined_call_operand.vmem [shape: bf16[6,4], index: 2, kind: input, shape index: {}]   ;;  %s261_s1 = inlined_call_operand.vmem [shape: f32[16,6], index: 1, kind: input, shape index: {}]   ;;  %s262_s4 = inlined_call_operand.vmem [shape: bf16[4,2], index: 4, kind: input, shape index: {}]   ;;  %s263_s3 = inlined_call_operand.vmem [shape: f32[1,4], index: 3, kind: input, shape index: {}]   ;;  %s264_s0 = inlined_call_operand.vmem [shape: bf16[16,18], index: 0, kind: input, shape index: {}]   ;;  %s265_s5 = inlined_call_operand.vmem [shape: bf16[16,128], index: 5, kind: output, shape index: {}]  }
   0x1   :  { %184 = vmatprep.subr.bf16.mxu0 %v200_v0  ;;  %v24_v1 = vld [vmem:[%s260_s2] sm:$0x7]  ;;  %186 = vmatprep.mubr.msk.bf16.mxu0 %vm201_vm1, %v200_v0  ;;  %v22_v3 = vld [vmem:[%s261_s1 + $0x8] sm:$0xff]  ;;  %vm89_vm3 = vcmask 1041408   ;;  %vm85_vm4 = vcmask 31744   ;;  %vm154_vm5 = vcmask 130048  }
   0x2   :  { %v21_v2 = vld [vmem:[%s261_s1] sm:$0xff]  ;;  %v38_v4 = vsel %vm36_vm0, %v24_v1, 0  ;;  %190 = vmatprep.subr.bf16.mxu1 %v200_v0  ;;  %192 = vmatprep.mubr.msk.bf16.mxu1 %vm201_vm1, %v200_v0  ;;  %s202_s1 = smov 16   ;;  %vm158_vm6 = vcmask 146432  }
   0x3   :  { %v23_v5 = vpack.c.bf16 %v22_v3, %v21_v2  ;;  %185 = vmatpush3.bf16.msra.mxu0 %v38_v4  ;;  %v84_v6 = vld [vmem:[%s262_s4] sm:$0x3]  ;;  %v135_v23 = vld [vmem:[%s264_s0 + $0x4] sm:$0xf] }
   0x4   :  { %v91_v7 = vsel %vm89_vm3, %v84_v6, 0  ;;  %v174_v8 = vld [vmem:[%s263_s3] ss:$0 sm:$0xff]  ;;  %v137_v26 = vunpack.c.l.bf16 %v135_v23 }
   0x5   :  { %191 = vmatpush3.bf16.msra.mxu1 %v91_v7  ;;  %v134_v22 = vld [vmem:[%s264_s0] sm:$0xf] }
   0x6   :  { %187 = vmatmul.mubr.msk.bf16.vlgmr.msra.gmra.mrb[0].mxu0 %vm32_vm2, %v23_v5  ;;  %v136_v25 = vunpack.c.l.bf16 %v134_v22  ;;  %v177_v30 = vcombine.low %v134_v22, %v135_v23 }
  0xd9   :  { %v74_v9 = vpop.f32.mrb[0].mxu0 }
  0xda   :  { %v75_v10 = vadd.f32 %v174_v8, %v74_v9  ;;  %v188_v11 = vpop.f32.mrb[1].mxu0 }
  0xdb   :  { %v77_v12 = vpop.f32.mrb[2].mxu0 }
  0xdc   :  { %v78_v13 = vadd.f32 %v174_v8, %v77_v12  ;;  %v189_v14 = vpop.f32.mrb[3].mxu0  ;;  %v81_v15 = vmax.f32 %v75_v10, 0.0 }
  0xde   :  { %v82_v16 = vmax.f32 %v78_v13, 0.0 }
  0xe0   :  { %v83_v17 = vpack.c.bf16 %v82_v16, %v81_v15 }
  0xe2   :  { %193 = vmatmul.mubr.msk.bf16.vlgmr.msra.gmra.mrb[0].mxu1 %vm85_vm4, %v83_v17 }
 0x1b5   :  { %v127_v18 = vpop.f32.mrb[0].mxu1 }
 0x1b6   :  { %140 = vrot.lane.b32.xlu0 %v127_v18, %s202_s1  ;;  %v194_v19 = vpop.f32.mrb[1].mxu1 }
 0x1b7   :  { %v130_v20 = vpop.f32.mrb[2].mxu1 }
 0x1b8   :  { %v195_v21 = vpop.f32.mrb[3].mxu1 }
 0x1ba   :  { %142 = vrot.lane.b32.xlu0 %v130_v20, %s202_s1 }
 0x228   :  { %v141_v24 = vpop.permute.xlu0 %140 }
 0x229   :  { %v146_v28 = vadd.f32 %v141_v24, %v136_v25 }
 0x22c   :  { %v143_v27 = vpop.permute.xlu0 %142 }
 0x22d   :  { %v147_v29 = vadd.f32 %v143_v27, %v137_v26 }
 0x22f   :  { %v148_v31 = vpack.c.bf16 %v147_v29, %v146_v28 }
 0x231   :  { %v157_v32 = vsel %vm154_vm5, %v177_v30, %v148_v31 }
 0x232   :  { %v160_v33 = vsel %vm158_vm6, %v157_v32, 0 }
 0x233   :  { %v178_v34 = vcombine.low %v160_v33, %v160_v33  ;;  %v179_v35 = vcombine.high %v160_v33, %v160_v33 }
 0x235   :  { %168 = vst [vmem:[%s265_s5] sm:$0xf] %v178_v34  ;;  %169 = vst [vmem:[%s265_s5 + $0x4] sm:$0xf] %v179_v35 }

// kernel: gipa_wide_forward.11
= control target key start
LH: loop header
LB: loop body
LE: loop exit
PB: predicated region body
PF: predicated region fallthrough
CT: control target
= control target key end

     0   :  { %v263_v0 = vmov 0.0   ;;  %vm264_vm0 = vmmov 0   ;;  %vm42_vm1 = vcmask 130048   ;;  %s350_s3 = inlined_call_operand.vmem [shape: bf16[16,16], index: 3, kind: input, shape index: {}]   ;;  %s351_s0 = inlined_call_operand.vmem [shape: f32[8,16], index: 0, kind: input, shape index: {}]   ;;  %s352_s4 = inlined_call_operand.vmem [shape: bf16[16,16], index: 4, kind: input, shape index: {}]   ;;  %s353_s6 = inlined_call_operand.vmem [shape: f32[1,16], index: 6, kind: input, shape index: {}]   ;;  %s354_s7 = inlined_call_operand.vmem [shape: f32[1,16], index: 7, kind: input, shape index: {}]   ;;  %s355_s5 = inlined_call_operand.vmem [shape: f32[1,16], index: 5, kind: input, shape index: {}]   ;;  %s356_s1 = inlined_call_operand.vmem [shape: f32[8,16], index: 1, kind: input, shape index: {}]   ;;  %s357_s2 = inlined_call_operand.vmem [shape: f32[8,16], index: 2, kind: input, shape index: {}]   ;;  %s358_s8 = inlined_call_operand.vmem [shape: f32[8,16], index: 8, kind: output, shape index: {0}]   ;;  %s359_s9 = inlined_call_operand.vmem [shape: f32[8,16], index: 9, kind: output, shape index: {1}]  }
   0x1   :  { %239 = vmatprep.subr.bf16.mxu0 %v263_v0  ;;  %v259_v1 = vld [vmem:[%s350_s3] sm:$0xff]   ;;  %241 = vmatprep.mubr.msk.bf16.mxu0 %vm264_vm0, %v263_v0 }
   0x2   :  { %v32_v2 = vld [vmem:[%s351_s0] sm:$0xff]  ;;  %245 = vmatprep.subr.bf16.mxu1 %v263_v0  ;;  %247 = vmatprep.mubr.msk.bf16.mxu1 %vm264_vm0, %v263_v0 }
   0x3   :  { %240 = vmatpush3.bf16.msra.mxu0 %v259_v1  ;;  %v35_v3 = vpack.c.bf16 %v32_v2, %v32_v2  ;;  %246 = vmatpush3.bf16.msra.mxu1 %v259_v1  ;;  %v260_v11 = vld [vmem:[%s352_s4] sm:$0xff]  }
   0x4   :  { %251 = vmatprep.subr.bf16.mxu0 %v263_v0  ;;  %v228_v18 = vld [vmem:[%s353_s6] ss:$0 sm:$0xff] }
   0x5   :  { %v229_v20 = vld [vmem:[%s354_s7] ss:$0 sm:$0xff] }
   0x6   :  { %242 = vmatmul.mubr.msk.bf16.vlgmr.msra.gmra.mrb[0].mxu0 %vm42_vm1, %v35_v3  ;;  %v230_v24 = vld [vmem:[%s355_s5] ss:$0 sm:$0xff] }
   0x7   :  { %253 = vmatprep.mubr.msk.bf16.mxu0 %vm264_vm0, %v263_v0  ;;  %252 = vmatpush3.bf16.msra.mxu0 %v260_v11  ;;  %v209_v26 = vld [vmem:[%s356_s1] sm:$0xff] }
   0x8   :  { %v211_v29 = vld [vmem:[%s357_s2] sm:$0xff] }
  0xd9   :  { %v80_v4 = vpop.f32.mrb[0].mxu0 }
  0xda   :  { %v86_v5 = vsub.f32 %v32_v2, %v80_v4  ;;  %v243_v6 = vpop.f32.mrb[1].mxu0 }
  0xdb   :  { %v83_v7 = vpop.f32.mrb[2].mxu0 }
  0xdc   :  { %v87_v8 = vmul.f32 %v86_v5, %v86_v5  ;;  %v244_v9 = vpop.f32.mrb[3].mxu0 }
  0xde   :  { %v88_v10 = vpack.c.bf16 %v87_v8, %v87_v8 }
  0xe0   :  { %248 = vmatmul.mubr.msk.bf16.vlgmr.msra.gmra.mrb[0].mxu1 %vm42_vm1, %v88_v10 }
 0x1b3   :  { %v126_v12 = vpop.f32.mrb[0].mxu1 }
 0x1b4   :  { %v127_v13 = vadd.f32 1e-09, %v126_v12  ;;  %v249_v14 = vpop.f32.mrb[1].mxu1 }
 0x1b5   :  { %v129_v15 = vpop.f32.mrb[2].mxu1 }
 0x1b6   :  { %261 = vrsqrt.f32 %v127_v13  ;;  %v250_v16 = vpop.f32.mrb[3].mxu1 }
 0x1c0   :  { %v262_v17 = vpop.eup %261 }
 0x1c1   :  { %v133_v19 = vmul.f32 %v262_v17, %v86_v5 }
 0x1c3   :  { %v141_v21 = vmul.f32 %v228_v18, %v133_v19 }
 0x1c5   :  { %v149_v22 = vadd.f32 %v229_v20, %v141_v21 }
 0x1c7   :  { %v150_v23 = vpack.c.bf16 %v149_v22, %v149_v22 }
 0x1c9   :  { %254 = vmatmul.mubr.msk.bf16.vlgmr.msra.gmra.mrb[4].mxu0 %vm42_vm1, %v150_v23 }
 0x29c   :  { %v203_v25 = vpop.f32.mrb[4].mxu0 }
 0x29d   :  { %v204_v27 = vadd.f32 %v230_v24, %v203_v25  ;;  %v255_v28 = vpop.f32.mrb[5].mxu0 }
 0x29e   :  { %v206_v30 = vpop.f32.mrb[6].mxu0 }
 0x29f   :  { %v210_v31 = vadd.f32 %v209_v26, %v204_v27  ;;  %v256_v32 = vpop.f32.mrb[7].mxu0 }
 0x2a1   :  { %v212_v33 = vadd.f32 %v211_v29, %v210_v31 }
 0x2a3   :  { %v213_v34 = vmul.f32 0.999995, %v212_v33  ;;  %215 = vst.msk [vmem:[%s358_s8] sm:$0xff] %vm42_vm1, %v212_v33 }
 0x2a5   :  { %v214_v35 = vmax.f32 %v213_v34, 0.0 }
 0x2a7   :  { %216 = vst.msk [vmem:[%s359_s9] sm:$0xff] %vm42_vm1, %v214_v35 }

// kernel: gipa_wide_forward.12
= control target key start
LH: loop header
LB: loop body
LE: loop exit
PB: predicated region body
PF: predicated region fallthrough
CT: control target
= control target key end

     0   :  { %v95_v0 = vmov 0.0   ;;  %vm96_vm0 = vmmov 0   ;;  %vm32_vm1 = vcmask 130048   ;;  %s129_s1 = inlined_call_operand.vmem [shape: bf16[16,128], index: 1, kind: input, shape index: {}]   ;;  %s130_s0 = inlined_call_operand.vmem [shape: f32[8,16], index: 0, kind: input, shape index: {}]   ;;  %s131_s2 = inlined_call_operand.vmem [shape: f32[1,128], index: 2, kind: input, shape index: {}]   ;;  %s132_s3 = inlined_call_operand.vmem [shape: f32[8,128], index: 3, kind: output, shape index: {}]  }
   0x1   :  { %86 = vmatprep.subr.bf16.mxu0 %v95_v0  ;;  %v94_v1 = vld [vmem:[%s129_s1] sm:$0xff]   ;;  %88 = vmatprep.mubr.msk.bf16.mxu0 %vm96_vm0, %v95_v0 }
   0x2   :  { %v15_v2 = vld [vmem:[%s130_s0] sm:$0xff]  ;;  %87 = vmatpush3.bf16.msra.mxu0 %v94_v1 }
   0x3   :  { %v16_v3 = vpack.c.bf16 %v15_v2, %v15_v2  ;;  %v81_v4 = vld [vmem:[%s131_s2] ss:$0 sm:$0xff] }
   0x5   :  { %89 = vmatmul.mubr.msk.bf16.vlgmr.msra.gmra.mrb[0].mxu0 %vm32_vm1, %v16_v3 }
  0xd8   :  { %v70_v5 = vpop.f32.mrb[0].mxu0 }
  0xd9   :  { %v71_v6 = vadd.f32 %v81_v4, %v70_v5  ;;  %v90_v7 = vpop.f32.mrb[1].mxu0 }
  0xda   :  { %v73_v8 = vpop.f32.mrb[2].mxu0 }
  0xdb   :  { %76 = vst [vmem:[%s132_s3] sm:$0xff] %v71_v6  ;;  %v91_v9 = vpop.f32.mrb[3].mxu0 }

// kernel: gipa_wide_forward.15
= control target key start
LH: loop header
LB: loop body
LE: loop exit
PB: predicated region body
PF: predicated region fallthrough
CT: control target
= control target key end

     0   :  { %v370_v1 = vmov 0.0   ;;  %vm47_vm0 = vcmask 130048   ;;  %vm371_vm1 = vmmov 0   ;;  %s478_s0 = inlined_call_operand.vmem [shape: f32[8,16], index: 0, kind: input, shape index: {}]   ;;  %s479_s1 = inlined_call_operand.vmem [shape: f32[8,16], index: 1, kind: input, shape index: {}]   ;;  %s480_s2 = inlined_call_operand.vmem [shape: f32[8,16], index: 2, kind: input, shape index: {}]   ;;  %s481_s3 = inlined_call_operand.vmem [shape: bf16[16,16], index: 3, kind: input, shape index: {}]   ;;  %s482_s4 = inlined_call_operand.vmem [shape: bf16[16,16], index: 4, kind: input, shape index: {}]   ;;  %s483_s5 = inlined_call_operand.vmem [shape: f32[1,16], index: 5, kind: input, shape index: {}]   ;;  %s484_s6 = inlined_call_operand.vmem [shape: f32[1,16], index: 6, kind: input, shape index: {}]   ;;  %s485_s7 = inlined_call_operand.vmem [shape: f32[1,16], index: 7, kind: input, shape index: {}]   ;;  %s486_s8 = inlined_call_operand.vmem [shape: bf16[16,5], index: 8, kind: input, shape index: {}]   ;;  %s487_s9 = inlined_call_operand.vmem [shape: f32[1,5], index: 9, kind: input, shape index: {}]   ;;  %s488_s10 = inlined_call_operand.hbm [shape: f32[8,5], index: 10, kind: output, shape index: {}]  }
   0x1   :  { %v341_v0 = vld [vmem:[%s481_s3] sm:$0xff]   ;;  %314 = vmatprep.subr.bf16.mxu0 %v370_v1  ;;  %320 = vmatprep.subr.bf16.mxu1 %v370_v1 }
   0x2   :  { %v37_v2 = vld [vmem:[%s478_s0] sm:$0xff]  ;;  %315 = vmatpush3.bf16.msra.mxu0 %v341_v0  ;;  %316 = vmatprep.mubr.msk.bf16.mxu0 %vm371_vm1, %v370_v1 }
   0x3   :  { %v40_v3 = vpack.c.bf16 %v37_v2, %v37_v2  ;;  %321 = vmatpush3.bf16.msra.mxu1 %v341_v0  ;;  %322 = vmatprep.mubr.msk.bf16.mxu1 %vm371_vm1, %v370_v1 }
   0x4   :  { %15 = vsyncpa [#allocation3], 0  ;;  %326 = vmatprep.subr.bf16.mxu0 %v370_v1  ;;  %332 = vmatprep.subr.bf16.mxu1 %v370_v1  ;;  %v342_v11 = vld [vmem:[%s482_s4] sm:$0xff]   ;;  %vm279_vm2 = vcmask 39936  }
   0x5   :  { %317 = vmatmul.mubr.msk.bf16.vlgmr.msra.gmra.mrb[0].mxu0 %vm47_vm0, %v40_v3  ;;  %v298_v18 = vld [vmem:[%s484_s6] ss:$0 sm:$0xff] }
   0x6   :  { %328 = vmatprep.mubr.msk.bf16.mxu0 %vm371_vm1, %v370_v1  ;;  %327 = vmatpush3.bf16.msra.mxu0 %v342_v11  ;;  %v299_v20 = vld [vmem:[%s485_s7] ss:$0 sm:$0xff] }
   0x7   :  { %v343_v24 = vld [vmem:[%s486_s8] sm:$0xff]  }
   0x8   :  { %v300_v25 = vld [vmem:[%s483_s5] ss:$0 sm:$0xff] }
   0x9   :  { %v214_v27 = vld [vmem:[%s479_s1] sm:$0xff]  ;;  %s372_s1 = smov [#allocation2]  }
   0xa   :  { %v216_v30 = vld [vmem:[%s480_s2] sm:$0xff]  ;;  %s287_s26 = sshll.u32 %s372_s1, 4  ;;  %s288_s26 = int_to_ptr.vmem [resolvable:$true] %s287_s26 }
   0xb   :  { %v303_v38 = vld [vmem:[%s487_s9] ss:$0 sm:$0xff]  ;;  %s346_s2 = scalar_lea.vmem %s288_s26, 128  ;;  %p351_p1 = scmp.lt.s32.totalorder %s288_s26, %s288_s26 }
   0xc   :  { %p347_p0 = scmp.ne.s32.totalorder %s288_s26, %s346_s2  ;;  %p352_p2 = scmp.lt.s32.totalorder %s346_s2, %s346_s2 }
   0xe   :  { %p353_p3 = por %p352_p2, %p351_p1 }
  0x10   :  { %p354_p4 = pnand %p353_p3, %p347_p0 }
  0xd8   :  { %v85_v4 = vpop.f32.mrb[0].mxu0 }
  0xd9   :  { %v91_v5 = vsub.f32 %v37_v2, %v85_v4  ;;  %v318_v6 = vpop.f32.mrb[1].mxu0 }
  0xda   :  { %v88_v7 = vpop.f32.mrb[2].mxu0 }
  0xdb   :  { %v92_v8 = vmul.f32 %v91_v5, %v91_v5  ;;  %v319_v9 = vpop.f32.mrb[3].mxu0 }
  0xdd   :  { %v93_v10 = vpack.c.bf16 %v92_v8, %v92_v8 }
  0xdf   :  { %323 = vmatmul.mubr.msk.bf16.vlgmr.msra.gmra.mrb[0].mxu1 %vm47_vm0, %v93_v10 }
  0xe0   :  { %334 = vmatprep.mubr.msk.bf16.mxu1 %vm371_vm1, %v370_v1  ;;  %333 = vmatpush3.bf16.msra.mxu1 %v343_v24 }
 0x1b2   :  { %v131_v12 = vpop.f32.mrb[0].mxu1 }
 0x1b3   :  { %v132_v13 = vadd.f32 1e-09, %v131_v12  ;;  %v324_v14 = vpop.f32.mrb[1].mxu1 }
 0x1b4   :  { %v134_v15 = vpop.f32.mrb[2].mxu1 }
 0x1b5   :  { %344 = vrsqrt.f32 %v132_v13  ;;  %v325_v16 = vpop.f32.mrb[3].mxu1 }
 0x1bf   :  { %v345_v17 = vpop.eup %344 }
 0x1c0   :  { %v138_v19 = vmul.f32 %v345_v17, %v91_v5 }
 0x1c2   :  { %v146_v21 = vmul.f32 %v298_v18, %v138_v19 }
 0x1c4   :  { %v154_v22 = vadd.f32 %v299_v20, %v146_v21 }
 0x1c6   :  { %v155_v23 = vpack.c.bf16 %v154_v22, %v154_v22 }
 0x1c8   :  { %329 = vmatmul.mubr.msk.bf16.vlgmr.msra.gmra.mrb[4].mxu0 %vm47_vm0, %v155_v23 }
 0x29b   :  { %v208_v26 = vpop.f32.mrb[4].mxu0 }
 0x29c   :  { %v209_v28 = vadd.f32 %v300_v25, %v208_v26  ;;  %v330_v29 = vpop.f32.mrb[5].mxu0 }
 0x29d   :  { %v211_v31 = vpop.f32.mrb[6].mxu0 }
 0x29e   :  { %v215_v32 = vadd.f32 %v214_v27, %v209_v28  ;;  %v331_v33 = vpop.f32.mrb[7].mxu0 }
 0x2a0   :  { %v217_v34 = vadd.f32 %v216_v30, %v215_v32 }
 0x2a2   :  { %v218_v35 = vmul.f32 0.999995, %v217_v34 }
 0x2a4   :  { %v219_v36 = vmax.f32 %v218_v35, 0.0 }
 0x2a6   :  { %v220_v37 = vpack.c.bf16 %v219_v36, %v219_v36 }
 0x2a8   :  { %335 = vmatmul.mubr.msk.bf16.vlgmr.msra.gmra.mrb[4].mxu1 %vm47_vm0, %v220_v37 }
 0x37b   :  { %v273_v39 = vpop.f32.mrb[4].mxu1 }
 0x37c   :  { %v274_v40 = vadd.f32 %v303_v38, %v273_v39  ;;  %v336_v41 = vpop.f32.mrb[5].mxu1 }
 0x37d   :  { %v276_v42 = vpop.f32.mrb[6].mxu1 }
 0x37e   :  { %v337_v43 = vpop.f32.mrb[7].mxu1  ;;  %280 = vst.msk [vmem:[#allocation2] sm:$0xff] %vm279_vm2, %v274_v40 }
 0x37f   :  { %357 = shalt.err (!%p354_p4)
}
 0x380   :  { %s358_s9 = scalar_lea.hbm %s488_s10, 128 }
 0x381   :  { %p359_p5 = scmp.ne.s32.totalorder %s488_s10, %s358_s9  ;;  %p362_p6 = scmp.lt.u32.totalorder %s358_s9, %s488_s10 }
 0x383   :  { %p364_p7 = pnand %p362_p6, %p359_p5 }
 0x385   :  { %367 = shalt.err (!%p364_p7)
}
 0x386   :  { %290 = dma.vmem_to_hbm [thread:$0]  %s288_s26, 128, %s488_s10, [#allocation3]  }
 0x387   :  { %368 = dma.done.wait [#allocation3], 128  }
 0x388   :  { %369 = vsyncadd [#allocation3], 4294967168 }
 0x389   :  { %294 = vsyncpa [#allocation3], 1 }

</bundles_post_ra>
